<compile_context>
chip_gen: v5e
topology: v5e:2x2
jax: 0.10.0
libtpu: 0.0.40
codegen_flags: <defaults>
</compile_context>

<pallas_src>
import functools
import re

import jax
import jax.numpy as jnp
from jax.experimental import pallas as pl
from jax.experimental.pallas import tpu as pltpu

_LANE = 128
_MIB = 1 << 20


def _critic_kernel(x_ref, w1t_ref, b1t_ref, w2t_ref, b2t_ref, w3t_ref, b3_ref,
                   o_ref, *, act_dtype):
    """Fused 3-layer MLP on one batch tile, hidden-major layout.

    x_ref  : (bt, D)  batch on sublanes, features on lanes (as stored in HBM)
    h      : (H, bt)  hidden on sublanes, batch on lanes
    o_ref  : (1, bt)  lane-dense value row
    """
    x = x_ref[...]

    # Layer 1: contract over the feature axis of both operands ("W1^T @ x^T").
    h = jax.lax.dot_general(
        w1t_ref[...], x,
        dimension_numbers=(((1,), (1,)), ((), ())),
        preferred_element_type=jnp.float32,
    ) + b1t_ref[...]                                          # (H, bt) f32
    h = jnp.tanh(h.astype(act_dtype))                         # EUP; bf16 on v6e/v7x

    # Layer 2: (H, H) @ (H, bt) -> (H, bt); bf16 x bf16 MXU when act_dtype=bf16.
    h = (jnp.dot(w2t_ref[...], h, preferred_element_type=jnp.float32)
         + b2t_ref[...])
    h = jnp.tanh(h.astype(act_dtype))

    # Layer 3: (1, H) @ (H, bt) -> (1, bt), already lane-dense.
    v = (jnp.dot(w3t_ref[...], h, preferred_element_type=jnp.float32)
         + b3_ref[...])
    o_ref[...] = v.astype(o_ref.dtype)


def _tpu_generation():
    """Best-effort TPU generation from device_kind (e.g. 'TPU v6e' -> 6)."""
    try:
        kind = jax.devices()[0].device_kind
        m = re.search(r"(\d+)", kind)
        if m:
            return int(m.group(1))
    except Exception:
        pass
    return 6  # conservative default


def _gen_config(gen):
    """(max_batch_tile, min_grid_steps) per chip generation."""
    if gen >= 7:
        # Big per-step DMA vs. 3.2 TB/s HBM, but keep >=4 steps so the grid
        # can be sharded across both v7x TensorCores.
        return 8192, 4
    if gen == 6:
        return 8192, 2
    # v5e and older: at ~4096 rows the f32 input DMA already hides the
    # per-step overhead; bigger tiles only stress scoped VMEM for no gain.
    return 4096, 2


def _default_act_dtype(gen):
    # bf16 tanh on the EUP is the single biggest lever on v6e/v7x; v5e has no
    # bf16 VPU/EUP path, keep f32 there.
    return jnp.bfloat16 if gen >= 6 else jnp.float32


def _pick_batch_tile(batch, max_tile, min_steps):
    candidates = [c for c in (16384, 8192, 4096, 2048, 1024, 512, 256)
                  if c <= max_tile]
    for t in candidates:
        if batch >= min_steps * t:
            return t
    return batch  # modest batch: one full-size tile (block == full array dims)


def _vmem_estimate_bytes(batch_tile, d, state_itemsize, act_itemsize, hidden):
    """Per-tile VMEM budget (double-buffered blocks + intermediates)."""
    d_lanes = max(_LANE, ((d + _LANE - 1) // _LANE) * _LANE)   # lane padding
    per_row = (
        2 * d_lanes * state_itemsize      # input block, double-buffered
        + d_lanes * state_itemsize        # possible layer-1 relayout copy of x
        + 2 * hidden * 4                  # f32 matmul results (h1t, h2t)
        + 2 * hidden * act_itemsize       # activation copies
        + 2 * 8 * 4                       # (1, bt) output, sublane-padded, 2 bufs
    )
    weights = 2 * 4 * (hidden * d_lanes + hidden * hidden
                       + 3 * hidden + hidden + 2)
    return per_row * batch_tile + weights + 2 * _MIB  # + compiler scratch headroom


def critic_forward(state, params, *, batch_tile=None, act_dtype=None,
                   min_pallas_batch=256):
    """state: (B, D) float32/bfloat16 -> value: (B, 1) float32.

    act_dtype: dtype for the tanh activations (and the layer-2/3 weights).
      Defaults by chip: bfloat16 on v6e/v7x, float32 on v5e and older.
    bf16 states are accepted as-is (layer-1 weights follow state.dtype) —
      recommended on v5e where the f32 input HBM stream is what binds.
    """
    B, D = state.shape
    w1, b1, w2, b2, w3, b3 = params
    H = w1.shape[1]           # 64
    OUT = w3.shape[1]         # 1
    assert OUT == 1

    gen = _tpu_generation()
    if act_dtype is None:
        act_dtype = _default_act_dtype(gen)
    act_dtype = jnp.dtype(act_dtype)

    # Tiny batches: a single-step kernel launch (+ pipeline setup) costs more
    # than XLA's fused tiny matmul chain — skip Pallas entirely.
    if batch_tile is None and B < min_pallas_batch:
        return critic_reference(state, params).astype(jnp.float32)

    if batch_tile is None:
        max_tile, min_steps = _gen_config(gen)
        batch_tile = _pick_batch_tile(B, max_tile, min_steps)
    assert batch_tile == B or batch_tile % 128 == 0, (
        "batch_tile must be the full batch or a multiple of 128 (lane width)")

    # Pad ragged batches up to a whole number of tiles.  Zero padding means
    # padded rows compute tanh(bias): finite, no NaNs; sliced off below.
    # (Keep the pad value zero.)
    num_tiles = pl.cdiv(B, batch_tile)
    b_pad = num_tiles * batch_tile
    if b_pad != B:
        state = jnp.pad(state, ((0, b_pad - B), (0, 0)))

    # Hidden-major ("transposed") weights -> lane-dense (1, batch_tile) output.
    # Layer-1 weights follow the state dtype (bf16 states feed the MXU
    # natively); layers 2-3 follow act_dtype so bf16 activations stay on the
    # packed bf16 MXU path with no per-element upcasts.
    mm_dtype = jnp.bfloat16 if act_dtype == jnp.dtype(jnp.bfloat16) else jnp.float32
    w1t = w1.T.astype(state.dtype)               # (H, D)
    b1t = b1.reshape(H, 1).astype(jnp.float32)
    w2t = w2.T.astype(mm_dtype)                  # (H, H)
    b2t = b2.reshape(H, 1).astype(jnp.float32)
    w3t = w3.T.astype(mm_dtype)                  # (1, H)
    b3r = b3.reshape(1, 1).astype(jnp.float32)

    vmem_est = _vmem_estimate_bytes(batch_tile, D, state.dtype.itemsize,
                                    act_dtype.itemsize, H)
    # Explicit scoped-VMEM: default (16/32 MiB) can be smaller than the
    # double-buffered, lane-padded input at large tiles.  48 MiB is safely
    # below v7x's 64 MiB physical and well below 128 MiB on v5e/v6e.
    vmem_limit = int(min(48 * _MIB, max(32 * _MIB, 1.5 * vmem_est)))

    full2d = lambda shape: pl.BlockSpec(shape, lambda i: (0, 0))  # resident operand

    out = pl.pallas_call(
        functools.partial(_critic_kernel, act_dtype=act_dtype),
        out_shape=jax.ShapeDtypeStruct((1, b_pad), jnp.float32),
        grid_spec=pltpu.PrefetchScalarGridSpec(
            num_scalar_prefetch=0,
            grid=(num_tiles,),
            in_specs=[
                pl.BlockSpec((batch_tile, D), lambda i: (i, 0)),   # state tile
                full2d((H, D)),   full2d((H, 1)),                  # layer 1
                full2d((H, H)),   full2d((H, 1)),                  # layer 2
                full2d((OUT, H)), full2d((OUT, 1)),                # layer 3
            ],
            out_specs=pl.BlockSpec((1, batch_tile), lambda i: (0, i)),
        ),
        compiler_params=pltpu.CompilerParams(
            dimension_semantics=("parallel",),
            vmem_limit_bytes=vmem_limit,
        ),
    )(state, w1t, b1t, w2t, b2t, w3t, b3r)

    # (1, b_pad) lane-dense row -> (B, 1) column: free row-major reshape + slice.
    return out.reshape(b_pad, 1)[:B]


def init_critic_params(key, global_state_dim, hidden=64, out_dim=1):
    """Deterministic synthetic init (PyTorch-style uniform fan-in bound)."""
    def linear(key, fan_in, fan_out):
        kw, kb = jax.random.split(key)
        bound = 1.0 / jnp.sqrt(fan_in)
        # Stored as (in, out) so the reference does x @ W.
        w = jax.random.uniform(kw, (fan_in, fan_out), jnp.float32, -bound, bound)
        b = jax.random.uniform(kb, (1, fan_out), jnp.float32, -bound, bound)
        return w, b

    k1, k2, k3 = jax.random.split(key, 3)
    w1, b1 = linear(k1, global_state_dim, hidden)
    w2, b2 = linear(k2, hidden, hidden)
    w3, b3 = linear(k3, hidden, out_dim)
    return (w1, b1, w2, b2, w3, b3)


def critic_reference(state, params):
    w1, b1, w2, b2, w3, b3 = params
    x = state.astype(jnp.float32)
    h1 = jnp.tanh(x @ w1 + b1)
    h2 = jnp.tanh(h1 @ w2 + b2)
    return h2 @ w3 + b3


if __name__ == "__main__":
    key = jax.random.PRNGKey(0)
    k_param, k_state = jax.random.split(key)

    global_state_dim = 32
    params = init_critic_params(k_param, global_state_dim)

    # Ragged batch on purpose: exercises padding + a multi-step grid on every
    # generation (tile auto-picked per chip).
    batch = 2304
    state = jax.random.normal(k_state, (batch, global_state_dim), jnp.float32)
    ref = critic_reference(state, params)

    # 1) f32 activations: tight numerical check of the Pallas path.
    out_f32 = jax.block_until_ready(
        critic_forward(state, params, act_dtype=jnp.float32))
    assert out_f32.shape == (batch, 1), out_f32.shape
    assert jnp.allclose(out_f32, ref, atol=1e-4, rtol=1e-4), (
        float(jnp.max(jnp.abs(out_f32 - ref))))

    # 2) Chip-default activations (bf16 on v6e/v7x): documented precision
    #    trade-off, so the tolerance is looser.
    out_auto = jax.block_until_ready(critic_forward(state, params))
    assert out_auto.shape == (batch, 1), out_auto.shape
    assert jnp.allclose(out_auto, ref, atol=5e-2, rtol=5e-2), (
        float(jnp.max(jnp.abs(out_auto - ref))))

    # 3) Tiny-batch dispatch (pure-JAX fallback).
    out_small = jax.block_until_ready(critic_forward(state[:8], params))
    assert out_small.shape == (8, 1), out_small.shape
    assert jnp.allclose(out_small, ref[:8], atol=1e-4, rtol=1e-4)

    print("KERNEL_OK")
</pallas_src>

<mosaic_0001>
module attributes {stable_mosaic.version = 11 : i64} {
  func.func @_critic_kernel(%arg0: i32, %arg1: memref<1024x32xf32, #tpu.memory_space<vmem>>, %arg2: memref<64x32xf32, #tpu.memory_space<vmem>>, %arg3: memref<64x1xf32, #tpu.memory_space<vmem>>, %arg4: memref<64x64xf32, #tpu.memory_space<vmem>>, %arg5: memref<64x1xf32, #tpu.memory_space<vmem>>, %arg6: memref<1x64xf32, #tpu.memory_space<vmem>>, %arg7: memref<1x1xf32, #tpu.memory_space<vmem>>, %arg8: memref<1x1024xf32, #tpu.memory_space<vmem>>) attributes {dimension_semantics = [#tpu.dimension_semantics<parallel>], iteration_bounds = array<i64: 3>, scalar_prefetch = 0 : i64, scratch_operands = 0 : i64, tpu.core_type = #tpu.core_type<tc>, window_params = [{transform_indices = @transform_0, window_bounds = array<i64: 1024, 32>}, {pipeline_mode = #tpu.pipeline_mode<synchronous>, transform_indices = @transform_1, window_bounds = array<i64: 64, 32>}, {pipeline_mode = #tpu.pipeline_mode<synchronous>, transform_indices = @transform_2, window_bounds = array<i64: 64, 1>}, {pipeline_mode = #tpu.pipeline_mode<synchronous>, transform_indices = @transform_3, window_bounds = array<i64: 64, 64>}, {pipeline_mode = #tpu.pipeline_mode<synchronous>, transform_indices = @transform_4, window_bounds = array<i64: 64, 1>}, {pipeline_mode = #tpu.pipeline_mode<synchronous>, transform_indices = @transform_5, window_bounds = array<i64: 1, 64>}, {pipeline_mode = #tpu.pipeline_mode<synchronous>, transform_indices = @transform_6, window_bounds = array<i64: 1, 1>}, {transform_indices = @transform_7, window_bounds = array<i64: 1, 1024>}]} {
    %c0 = arith.constant 0 : index
    %c0_0 = arith.constant 0 : index
    %0 = vector.load %arg1[%c0, %c0_0] : memref<1024x32xf32, #tpu.memory_space<vmem>>, vector<1024x32xf32>
    %c0_1 = arith.constant 0 : index
    %c0_2 = arith.constant 0 : index
    %1 = vector.load %arg2[%c0_1, %c0_2] : memref<64x32xf32, #tpu.memory_space<vmem>>, vector<64x32xf32>
    %cst = arith.constant dense<0.000000e+00> : vector<64x1024xf32>
    %2 = tpu.matmul %1, %0, %cst {dimension_numbers = #tpu.dot_dimension_numbers<[1], [1], [0], [0], [0, 0, 1, 0], [], []>} : vector<64x32xf32>, vector<1024x32xf32>, vector<64x1024xf32> -> vector<64x1024xf32>
    %c0_3 = arith.constant 0 : index
    %c0_4 = arith.constant 0 : index
    %3 = vector.load %arg3[%c0_3, %c0_4] : memref<64x1xf32, #tpu.memory_space<vmem>>, vector<64x1xf32>
    %4 = vector.broadcast %3 : vector<64x1xf32> to vector<64x1024xf32>
    %5 = arith.addf %2, %4 : vector<64x1024xf32>
    %6 = math.tanh %5 : vector<64x1024xf32>
    %c0_5 = arith.constant 0 : index
    %c0_6 = arith.constant 0 : index
    %7 = vector.load %arg4[%c0_5, %c0_6] : memref<64x64xf32, #tpu.memory_space<vmem>>, vector<64x64xf32>
    %cst_7 = arith.constant dense<0.000000e+00> : vector<64x1024xf32>
    %8 = tpu.matmul %7, %6, %cst_7 {dimension_numbers = #tpu.dot_dimension_numbers<[1], [0], [0], [1], [0, 0, 1, 1], [], []>} : vector<64x64xf32>, vector<64x1024xf32>, vector<64x1024xf32> -> vector<64x1024xf32>
    %c0_8 = arith.constant 0 : index
    %c0_9 = arith.constant 0 : index
    %9 = vector.load %arg5[%c0_8, %c0_9] : memref<64x1xf32, #tpu.memory_space<vmem>>, vector<64x1xf32>
    %10 = vector.broadcast %9 : vector<64x1xf32> to vector<64x1024xf32>
    %11 = arith.addf %8, %10 : vector<64x1024xf32>
    %12 = math.tanh %11 : vector<64x1024xf32>
    %c0_10 = arith.constant 0 : index
    %c0_11 = arith.constant 0 : index
    %13 = vector.load %arg6[%c0_10, %c0_11] : memref<1x64xf32, #tpu.memory_space<vmem>>, vector<1x64xf32>
    %cst_12 = arith.constant dense<0.000000e+00> : vector<1x1024xf32>
    %14 = tpu.matmul %13, %12, %cst_12 {dimension_numbers = #tpu.dot_dimension_numbers<[1], [0], [0], [1], [0, 0, 1, 1], [], []>} : vector<1x64xf32>, vector<64x1024xf32>, vector<1x1024xf32> -> vector<1x1024xf32>
    %c0_13 = arith.constant 0 : index
    %c0_14 = arith.constant 0 : index
    %15 = vector.load %arg7[%c0_13, %c0_14] : memref<1x1xf32, #tpu.memory_space<vmem>>, vector<1x1xf32>
    %16 = vector.broadcast %15 : vector<1x1xf32> to vector<1x1024xf32>
    %17 = arith.addf %14, %16 : vector<1x1024xf32>
    %c0_15 = arith.constant 0 : index
    %c0_16 = arith.constant 0 : index
    %18 = vector.load %arg8[%c0_15, %c0_16] : memref<1x1024xf32, #tpu.memory_space<vmem>>, vector<1x1024xf32>
    tpu.vector_store %arg8[%c0_15, %c0_16], %17 {strides = array<i32>} : memref<1x1024xf32, #tpu.memory_space<vmem>>, vector<1x1024xf32>,
    return
  }
  func.func @transform_0(%arg0: i32) -> (i32, i32) {
    %c0_i32 = arith.constant 0 : i32
    %c0_i32_0 = arith.constant 0 : i32
    return %arg0, %c0_i32 : i32, i32
  }
  func.func @transform_1(%arg0: i32) -> (i32, i32) {
    %c0_i32 = arith.constant 0 : i32
    %c0_i32_0 = arith.constant 0 : i32
    %c0_i32_1 = arith.constant 0 : i32
    return %c0_i32, %c0_i32_0 : i32, i32
  }
  func.func @transform_2(%arg0: i32) -> (i32, i32) {
    %c0_i32 = arith.constant 0 : i32
    %c0_i32_0 = arith.constant 0 : i32
    %c0_i32_1 = arith.constant 0 : i32
    return %c0_i32, %c0_i32_0 : i32, i32
  }
  func.func @transform_3(%arg0: i32) -> (i32, i32) {
    %c0_i32 = arith.constant 0 : i32
    %c0_i32_0 = arith.constant 0 : i32
    %c0_i32_1 = arith.constant 0 : i32
    return %c0_i32, %c0_i32_0 : i32, i32
  }
  func.func @transform_4(%arg0: i32) -> (i32, i32) {
    %c0_i32 = arith.constant 0 : i32
    %c0_i32_0 = arith.constant 0 : i32
    %c0_i32_1 = arith.constant 0 : i32
    return %c0_i32, %c0_i32_0 : i32, i32
  }
  func.func @transform_5(%arg0: i32) -> (i32, i32) {
    %c0_i32 = arith.constant 0 : i32
    %c0_i32_0 = arith.constant 0 : i32
    %c0_i32_1 = arith.constant 0 : i32
    return %c0_i32, %c0_i32_0 : i32, i32
  }
  func.func @transform_6(%arg0: i32) -> (i32, i32) {
    %c0_i32 = arith.constant 0 : i32
    %c0_i32_0 = arith.constant 0 : i32
    %c0_i32_1 = arith.constant 0 : i32
    return %c0_i32, %c0_i32_0 : i32, i32
  }
  func.func @transform_7(%arg0: i32) -> (i32, i32) {
    %c0_i32 = arith.constant 0 : i32
    %c0_i32_0 = arith.constant 0 : i32
    return %c0_i32, %arg0 : i32, i32
  }
}

</mosaic_0001>

<bundles_post_ra>
// kernel: tpu_custom_call.1
= control target key start
LH: loop header
LB: loop body
LE: loop exit
PB: predicated region body
PF: predicated region fallthrough
CT: control target
= control target key end

     0   :  { %s3832_s0 = inlined_call_operand.vmem [shape: f32[3072,32], index: 0, kind: input, shape index: {}]   ;;  %s3833_s1 = inlined_call_operand.vmem [shape: f32[64,32], index: 1, kind: input, shape index: {}]   ;;  %s3834_s2 = inlined_call_operand.vmem [shape: f32[64,1], index: 2, kind: input, shape index: {}]   ;;  %s3835_s3 = inlined_call_operand.vmem [shape: f32[64,64], index: 3, kind: input, shape index: {}]   ;;  %s3836_s4 = inlined_call_operand.vmem [shape: f32[64,1], index: 4, kind: input, shape index: {}]   ;;  %s3837_s5 = inlined_call_operand.vmem [shape: f32[1,64], index: 5, kind: input, shape index: {}]   ;;  %s3838_s6 = inlined_call_operand.<no memory space> [shape: f32[1,1], index: 6, kind: input, shape index: {}]   ;;  %s3839_s7 = inlined_call_operand.hbm [shape: f32[1,3072], index: 7, kind: output, shape index: {}]  }
   0x1   :  { %v12_v0 = vstv %s3838_s6 }
   0x2   :  { %13 = vst [vmem:[#allocation2] sm:$0x1] %v12_v0 }
   0x3   :  { %14 = vsyncpa [#allocation4], 0 }
   0x4   :  { %16 = vsyncpa [#allocation4 + $0x1], 0  ;;  %s2699_s26 = smov 0   ;;  %s2701_s27 = smov 0  }
   0x5   :  { %s2703_s28 = smov 0   ;;  %s2705_s29 = smov 0  }
   0x6 LB: > { %s2720_s6 = sadd.s32 4294967295, %s2653_s29   ;;  %s2017_s30 = sadd.s32 4294967294, %s2653_s29   ;;  %s2653_s29 = sphi %s2705_s29, %s3845_s29   ;;  %s2649_s28 = sphi %s2703_s28, %s3844_s28   ;;  %s2645_s27 = sphi %s2701_s27, %s3843_s27   ;;  %s2641_s26 = sphi %s2699_s26, %s3842_s26  }
   0x7   : > { %s2724_s8 = sadd.s32 1, %s2653_s29   ;;  %s181_s9 = sadd.s32 1, %s2649_s28 }
   0x8   : > { %s178_s10 = ssub.s32 %s2653_s29, %s2724_s8  ;;  %p191_p0 = scmp.ne.s32.totalorder %s2649_s28, %s2645_s27 }
   0x9   : > { %p179_p1 = scmp.eq.s32.totalorder %s178_s10, 0  ;;  %p192_p2 = scmp.eq.s32.totalorder %s2720_s6, 2 }
   0xa   : > { %p197_p3 = scmp.ne.s32.totalorder %s2645_s27, %s2641_s26  ;;  %p198_p4 = scmp.eq.s32.totalorder %s2017_s30, 2 }
   0xb   : > { %s2735_s11 = scalar_select %p179_p1, %s2649_s28, %s181_s9  }
   0xc   : > { %p2737_p5 = por %p192_p2, %p191_p0  ;;  %p2741_p6 = por %p198_p4, %p197_p3 }
   0xd   : > { %p2020_p7 = scmp.ge.s32.totalorder %s2653_s29, 1  ;;  %p243_p8 = scmp.lt.s32.totalorder %s2653_s29, 4 }
   0xf   : > { %p244_p9 = pnand %p2020_p7, %p243_p8 }
  0x10   : > { %s2022_s14 = sshll.u32 (!%p244_p9), %s2720_s6, 7  ;;  %s272_s9 = sand.u32 (!%p244_p9), 1, %s2645_s27  }
  0x11   : > { %247 = sbr.rel (%p244_p9) target bundleno = 726 (0x2d6), region = 48  ;;  %p276_p10 = scmp.lt.s32.totalorder (!%p244_p9), %s2022_s14, 383 }
  0x12   : > { %s3795_s10 = sshll.u32 (!%p244_p9), %s272_s9, 3  ;;  %s1943_s21 = scalar_lea.sflag (!%p244_p9), [#allocation4], %s272_s9 }
  0x13   : > { %s2611_s25 = scalar_lea.hbm (!%p244_p9), %s3839_s7, 24 }
  0x16   : > { %s3847_s14 = smov (!%p276_p10, %s2022_s14), 383  ;;  %vm466_vm0 = vcmask 261120   ;;  %v2655_v37 = vmov 0   ;;  %v423_v38 = vld [vmem:[%s3834_s2 + $0x28] sm:$0xff]  ;;  %v425_v47 = vld [vmem:[%s3834_s2 + $0x38] sm:$0xff]  ;;  %v422_v48 = vld [vmem:[%s3834_s2 + $0x20] sm:$0xff] }
  0x17   : > { %s2023_s15 = sshll.u32 %s3847_s14, 3  ;;  %2333 = vset.pattern.permute.xlu1 %v2655_v37  ;;  %2332 = vset.pattern.permute.xlu0 %v2655_v37  ;;  %v424_v57 = vld [vmem:[%s3834_s2 + $0x30] sm:$0xff]  ;;  %v418_v58 = vld [vmem:[%s3834_s2] sm:$0xff]  ;;  %vm1323_vm1 = vcmask 523264   ;;  %s2289_s14 = sshll.u32 %s2720_s6, 3  ;;  %vm1926_vm2 = vcmask 1040384  }
  0x18   : > { %s2751_s18 = scalar_lea.vmem %s3832_s0, %s2023_s15  ;;  %2334 = vset.pattern.permute.xlu2 %v2655_v37  ;;  %453 = vperm.xlu1 %2333, %v423_v38   ;;  %vm1928_vm3 = vcmask 1042434   ;;  %s1953_s17 = scalar_lea.hbm %s3839_s7, %s2289_s14  ;;  %vm1932_vm4 = vcmask 1044484   ;;  %vm1934_vm5 = vcmask 1046534   ;;  %vm1930_vm6 = vcmask 1041408  }
  0x19   : > { %v297_v1 = vld [vmem:[%s2751_s18 + $0x78] sm:$0xff]  ;;  %v296_v5 = vld [vmem:[%s2751_s18 + $0x70] sm:$0xff]  ;;  %v295_v9 = vld [vmem:[%s2751_s18 + $0x68] sm:$0xff]  ;;  %463 = vperm.xlu0 %2332, %v425_v47   ;;  %vm1936_vm7 = vcmask 1045508   ;;  %s274_s6 = scalar_lea.vmem [#allocation3], %s3795_s10  ;;  %s1957_s20 = sshll.u32 %s1953_s17, 4  ;;  %s1958_s20 = int_to_ptr.hbm [resolvable:$true] %s1957_s20 }
  0x1a   : > { %v313_v2 = vld [vmem:[%s2751_s18 + $0xf8] sm:$0xff]  ;;  %2024 = vmatpush.xpose.msk.msra.mxu0 %vm466_vm0, %v297_v1  ;;  %v312_v6 = vld [vmem:[%s2751_s18 + $0xf0] sm:$0xff]  ;;  %v311_v10 = vld [vmem:[%s2751_s18 + $0xe8] sm:$0xff]  ;;  %s1955_s19 = sshll.u32 %s274_s6, 4  ;;  %vm1938_vm8 = vcmask 1043456   ;;  %s2605_s22 = sshra.s32 %s1958_s20, 4  ;;  %s1956_s19 = int_to_ptr.vmem [resolvable:$true] %s1955_s19  ;;  %s2606_s22 = int_to_ptr.hbm [resolvable:$true] %s2605_s22 }
  0x1b   : > { %v329_v3 = vld [vmem:[%s2751_s18 + $0x178] sm:$0xff]  ;;  %2048 = vmatpush.xpose.msk.msra.mxu1 %vm466_vm0, %v313_v2  ;;  %v328_v7 = vld [vmem:[%s2751_s18 + $0x170] sm:$0xff]  ;;  %v327_v11 = vld [vmem:[%s2751_s18 + $0x168] sm:$0xff]  ;;  %p2612_p0 = scmp.lt.s32.totalorder %s2606_s22, %s3839_s7 }
  0x1c   : > { %v345_v4 = vld [vmem:[%s2751_s18 + $0x1f8] sm:$0xff]  ;;  %2072 = vmatpush.xpose.msk.msra.mxu2 %vm466_vm0, %v329_v3  ;;  %v344_v8 = vld [vmem:[%s2751_s18 + $0x1f0] sm:$0xff]  ;;  %v343_v12 = vld [vmem:[%s2751_s18 + $0x1e8] sm:$0xff] }
  0x1d   : > { %2096 = vmatpush.xpose.msk.msra.mxu3 %vm466_vm0, %v345_v4  ;;  %v294_v13 = vld [vmem:[%s2751_s18 + $0x60] sm:$0xff]  ;;  %v293_v17 = vld [vmem:[%s2751_s18 + $0x58] sm:$0xff]  ;;  %v292_v21 = vld [vmem:[%s2751_s18 + $0x50] sm:$0xff] }
  0x1e   : > { %2025 = vmatpush.xpose.msk.msra.mxu0 %vm466_vm0, %v296_v5  ;;  %v310_v14 = vld [vmem:[%s2751_s18 + $0xe0] sm:$0xff]  ;;  %v309_v18 = vld [vmem:[%s2751_s18 + $0xd8] sm:$0xff]  ;;  %v308_v22 = vld [vmem:[%s2751_s18 + $0xd0] sm:$0xff] }
  0x1f   : > { %2049 = vmatpush.xpose.msk.msra.mxu1 %vm466_vm0, %v312_v6  ;;  %v326_v15 = vld [vmem:[%s2751_s18 + $0x160] sm:$0xff]  ;;  %v325_v19 = vld [vmem:[%s2751_s18 + $0x158] sm:$0xff]  ;;  %v324_v23 = vld [vmem:[%s2751_s18 + $0x150] sm:$0xff] }
  0x20   : > { %2073 = vmatpush.xpose.msk.msra.mxu2 %vm466_vm0, %v328_v7  ;;  %v342_v16 = vld [vmem:[%s2751_s18 + $0x1e0] sm:$0xff]  ;;  %v341_v20 = vld [vmem:[%s2751_s18 + $0x1d8] sm:$0xff]  ;;  %v340_v24 = vld [vmem:[%s2751_s18 + $0x1d0] sm:$0xff]  ;;  %448 = vperm.xlu1 %2333, %v422_v48  }
  0x21   : > { %2097 = vmatpush.xpose.msk.msra.mxu3 %vm466_vm0, %v344_v8  ;;  %v291_v25 = vld [vmem:[%s2751_s18 + $0x48] sm:$0xff]  ;;  %v290_v29 = vld [vmem:[%s2751_s18 + $0x40] sm:$0xff]  ;;  %v289_v33 = vld [vmem:[%s2751_s18 + $0x38] sm:$0xff]  ;;  %458 = vperm.xlu0 %2332, %v424_v57  }
  0x22   : > { %2026 = vmatpush.xpose.msk.msra.mxu0 %vm466_vm0, %v295_v9  ;;  %v307_v26 = vld [vmem:[%s2751_s18 + $0xc8] sm:$0xff]  ;;  %v306_v30 = vld [vmem:[%s2751_s18 + $0xc0] sm:$0xff]  ;;  %v305_v34 = vld [vmem:[%s2751_s18 + $0xb8] sm:$0xff] }
  0x23   : > { %2050 = vmatpush.xpose.msk.msra.mxu1 %vm466_vm0, %v311_v10  ;;  %v323_v27 = vld [vmem:[%s2751_s18 + $0x148] sm:$0xff]  ;;  %v322_v31 = vld [vmem:[%s2751_s18 + $0x140] sm:$0xff]  ;;  %v321_v35 = vld [vmem:[%s2751_s18 + $0x138] sm:$0xff] }
  0x24   : > { %2074 = vmatpush.xpose.msk.msra.mxu2 %vm466_vm0, %v327_v11  ;;  %v339_v28 = vld [vmem:[%s2751_s18 + $0x1c8] sm:$0xff]  ;;  %v338_v32 = vld [vmem:[%s2751_s18 + $0x1c0] sm:$0xff]  ;;  %v337_v36 = vld [vmem:[%s2751_s18 + $0x1b8] sm:$0xff] }
  0x25   : > { %2098 = vmatpush.xpose.msk.msra.mxu3 %vm466_vm0, %v343_v12  ;;  %v288_v39 = vld [vmem:[%s2751_s18 + $0x30] sm:$0xff]  ;;  %v287_v43 = vld [vmem:[%s2751_s18 + $0x28] sm:$0xff]  ;;  %v286_v49 = vld [vmem:[%s2751_s18 + $0x20] sm:$0xff] }
  0x26   : > { %2027 = vmatpush.xpose.msk.msra.mxu0 %vm466_vm0, %v294_v13  ;;  %v304_v40 = vld [vmem:[%s2751_s18 + $0xb0] sm:$0xff]  ;;  %v303_v44 = vld [vmem:[%s2751_s18 + $0xa8] sm:$0xff]  ;;  %v302_v50 = vld [vmem:[%s2751_s18 + $0xa0] sm:$0xff] }
  0x27   : > { %2051 = vmatpush.xpose.msk.msra.mxu1 %vm466_vm0, %v310_v14  ;;  %v320_v41 = vld [vmem:[%s2751_s18 + $0x130] sm:$0xff]  ;;  %v319_v45 = vld [vmem:[%s2751_s18 + $0x128] sm:$0xff]  ;;  %v318_v51 = vld [vmem:[%s2751_s18 + $0x120] sm:$0xff] }
  0x28   : > { %2075 = vmatpush.xpose.msk.msra.mxu2 %vm466_vm0, %v326_v15  ;;  %v336_v42 = vld [vmem:[%s2751_s18 + $0x1b0] sm:$0xff]  ;;  %v335_v46 = vld [vmem:[%s2751_s18 + $0x1a8] sm:$0xff]  ;;  %v334_v52 = vld [vmem:[%s2751_s18 + $0x1a0] sm:$0xff]  ;;  %428 = vperm.xlu1 %2333, %v418_v58  }
  0x29   : > { %2099 = vmatpush.xpose.msk.msra.mxu3 %vm466_vm0, %v342_v16  ;;  %v285_v53 = vld [vmem:[%s2751_s18 + $0x18] sm:$0xff]  ;;  %v284_v59 = vld [vmem:[%s2751_s18 + $0x10] sm:$0xff]  ;;  %v283_v63 = vld [vmem:[%s2751_s18 + $0x8] sm:$0xff] }
  0x2a   : > { %2028 = vmatpush.xpose.msk.msra.mxu0 %vm466_vm0, %v293_v17  ;;  %v301_v54 = vld [vmem:[%s2751_s18 + $0x98] sm:$0xff]  ;;  %v300_v60 = vld [vmem:[%s2751_s18 + $0x90] sm:$0xff]  ;;  %v299_v0 = vld [vmem:[%s2751_s18 + $0x88] sm:$0xff] }
  0x2b   : > { %2052 = vmatpush.xpose.msk.msra.mxu1 %vm466_vm0, %v309_v18  ;;  %v317_v55 = vld [vmem:[%s2751_s18 + $0x118] sm:$0xff]  ;;  %v316_v61 = vld [vmem:[%s2751_s18 + $0x110] sm:$0xff]  ;;  %v315_v1 = vld [vmem:[%s2751_s18 + $0x108] sm:$0xff] }
  0x2c   : > { %2076 = vmatpush.xpose.msk.msra.mxu2 %vm466_vm0, %v325_v19  ;;  %v333_v56 = vld [vmem:[%s2751_s18 + $0x198] sm:$0xff]  ;;  %v332_v62 = vld [vmem:[%s2751_s18 + $0x190] sm:$0xff]  ;;  %v331_v2 = vld [vmem:[%s2751_s18 + $0x188] sm:$0xff] }
  0x2d   : > { %2100 = vmatpush.xpose.msk.msra.mxu3 %vm466_vm0, %v341_v20  ;;  %v419_v3 = vld [vmem:[%s3834_s2 + $0x8] sm:$0xff]  ;;  %v282_v4 = vld [vmem:[%s2751_s18] sm:$0xff]  ;;  %v361_v8 = vld [vmem:[%s2751_s18 + $0x278] sm:$0xff] }
  0x2e   : > { %2029 = vmatpush.xpose.msk.msra.mxu0 %vm466_vm0, %v292_v21  ;;  %v298_v5 = vld [vmem:[%s2751_s18 + $0x80] sm:$0xff]  ;;  %433 = vperm.xlu0 %2332, %v419_v3   ;;  %v377_v9 = vld [vmem:[%s2751_s18 + $0x2f8] sm:$0xff]  ;;  %v360_v13 = vld [vmem:[%s2751_s18 + $0x270] sm:$0xff] }
  0x2f   : > { %2053 = vmatpush.xpose.msk.msra.mxu1 %vm466_vm0, %v308_v22  ;;  %v314_v6 = vld [vmem:[%s2751_s18 + $0x100] sm:$0xff]  ;;  %v393_v11 = vld [vmem:[%s2751_s18 + $0x378] sm:$0xff]  ;;  %v376_v14 = vld [vmem:[%s2751_s18 + $0x2f0] sm:$0xff] }
  0x30   : > { %2077 = vmatpush.xpose.msk.msra.mxu2 %vm466_vm0, %v324_v23  ;;  %v330_v7 = vld [vmem:[%s2751_s18 + $0x180] sm:$0xff]  ;;  %v409_v12 = vld [vmem:[%s2751_s18 + $0x3f8] sm:$0xff]  ;;  %v392_v15 = vld [vmem:[%s2751_s18 + $0x370] sm:$0xff] }
  0x31   : > { %2101 = vmatpush.xpose.msk.msra.mxu3 %vm466_vm0, %v340_v24  ;;  %v2902_v10 = vld [vmem:[%s3833_s1] sm:$0xff]  ;;  %v408_v16 = vld [vmem:[%s2751_s18 + $0x3f0] sm:$0xff]  ;;  %v359_v17 = vld [vmem:[%s2751_s18 + $0x268] sm:$0xff] }
  0x32   : > { %2030 = vmatpush.xpose.msk.msra.mxu0 %vm466_vm0, %v291_v25  ;;  %v375_v18 = vld [vmem:[%s2751_s18 + $0x2e8] sm:$0xff]  ;;  %v358_v22 = vld [vmem:[%s2751_s18 + $0x260] sm:$0xff]  ;;  %v1278_v48 = vld [vmem:[%s3836_s4 + $0x18] sm:$0xff] }
  0x33   : > { %2054 = vmatpush.xpose.msk.msra.mxu1 %vm466_vm0, %v307_v26  ;;  %v2931_v19 = vld [vmem:[%s3833_s1 + $0x8] sm:$0xff]  ;;  %v374_v23 = vld [vmem:[%s2751_s18 + $0x2e0] sm:$0xff]  ;;  %v357_v26 = vld [vmem:[%s2751_s18 + $0x258] sm:$0xff] }
  0x34   : > { %2078 = vmatpush.xpose.msk.msra.mxu2 %vm466_vm0, %v323_v27  ;;  %v391_v20 = vld [vmem:[%s2751_s18 + $0x368] sm:$0xff]  ;;  %v390_v24 = vld [vmem:[%s2751_s18 + $0x360] sm:$0xff]  ;;  %v373_v27 = vld [vmem:[%s2751_s18 + $0x2d8] sm:$0xff] }
  0x35   : > { %2102 = vmatpush.xpose.msk.msra.mxu3 %vm466_vm0, %v339_v28  ;;  %v407_v21 = vld [vmem:[%s2751_s18 + $0x3e8] sm:$0xff]  ;;  %v406_v25 = vld [vmem:[%s2751_s18 + $0x3e0] sm:$0xff]  ;;  %v2960_v28 = vld [vmem:[%s3833_s1 + $0x10] sm:$0xff] }
  0x36   : > { %2031 = vmatpush.xpose.msk.msra.mxu0 %vm466_vm0, %v290_v29  ;;  %v389_v29 = vld [vmem:[%s2751_s18 + $0x358] sm:$0xff]  ;;  %v355_v37 = vld [vmem:[%s2751_s18 + $0x248] sm:$0xff]  ;;  %v402_v47 = vld [vmem:[%s2751_s18 + $0x3c0] sm:$0xff] }
  0x37   : > { %2055 = vmatpush.xpose.msk.msra.mxu1 %vm466_vm0, %v306_v30  ;;  %v405_v30 = vld [vmem:[%s2751_s18 + $0x3d8] sm:$0xff]  ;;  %v371_v38 = vld [vmem:[%s2751_s18 + $0x2c8] sm:$0xff]  ;;  %v384_v57 = vld [vmem:[%s2751_s18 + $0x330] sm:$0xff] }
  0x38   : > { %2079 = vmatpush.xpose.msk.msra.mxu2 %vm466_vm0, %v322_v31  ;;  %v356_v31 = vld [vmem:[%s2751_s18 + $0x250] sm:$0xff]  ;;  %v1741_v3 = vld [vmem:[#allocation2] sm:$0x1] }
  0x39   : > { %2103 = vmatpush.xpose.msk.msra.mxu3 %vm466_vm0, %v338_v32  ;;  %v372_v32 = vld [vmem:[%s2751_s18 + $0x2d0] sm:$0xff] }
  0x3a   : > { %2032 = vmatpush.xpose.msk.msra.mxu0 %vm466_vm0, %v289_v33  ;;  %v421_v33 = vld [vmem:[%s3834_s2 + $0x18] sm:$0xff]  ;;  %v400_v58 = vld [vmem:[%s2751_s18 + $0x3b0] sm:$0xff] }
  0x3b   : > { %2056 = vmatpush.xpose.msk.msra.mxu1 %vm466_vm0, %v305_v34  ;;  %v388_v34 = vld [vmem:[%s2751_s18 + $0x350] sm:$0xff]  ;;  %443 = vperm.xlu2 %2334, %v421_v33  }
  0x3c   : > { %2080 = vmatpush.xpose.msk.msra.mxu2 %vm466_vm0, %v321_v35  ;;  %v404_v35 = vld [vmem:[%s2751_s18 + $0x3d0] sm:$0xff] }
  0x3d   : > { %2104 = vmatpush.xpose.msk.msra.mxu3 %vm466_vm0, %v337_v36  ;;  %v1281_v36 = vld [vmem:[%s3836_s4 + $0x30] sm:$0xff] }
  0x3e   : > { %2033 = vmatpush.xpose.msk.msra.mxu0 %vm466_vm0, %v288_v39  ;;  %1315 = vperm.xlu0 %2332, %v1281_v36   ;;  %v2995_v39 = vld [vmem:[%s3833_s1 + $0x18] sm:$0xff] }
  0x3f   : > { %2057 = vmatpush.xpose.msk.msra.mxu1 %vm466_vm0, %v304_v40  ;;  %v387_v40 = vld [vmem:[%s2751_s18 + $0x348] sm:$0xff] }
  0x40   : > { %2081 = vmatpush.xpose.msk.msra.mxu2 %vm466_vm0, %v320_v41  ;;  %v403_v41 = vld [vmem:[%s2751_s18 + $0x3c8] sm:$0xff] }
  0x41   : > { %2105 = vmatpush.xpose.msk.msra.mxu3 %vm466_vm0, %v336_v42  ;;  %v354_v42 = vld [vmem:[%s2751_s18 + $0x240] sm:$0xff] }
  0x42   : > { %2034 = vmatpush.xpose.msk.msra.mxu0 %vm466_vm0, %v287_v43  ;;  %v370_v43 = vld [vmem:[%s2751_s18 + $0x2c0] sm:$0xff] }
  0x43   : > { %2058 = vmatpush.xpose.msk.msra.mxu1 %vm466_vm0, %v303_v44  ;;  %v420_v44 = vld [vmem:[%s3834_s2 + $0x10] sm:$0xff] }
  0x44   : > { %2082 = vmatpush.xpose.msk.msra.mxu2 %vm466_vm0, %v319_v45  ;;  %v1280_v45 = vld [vmem:[%s3836_s4 + $0x28] sm:$0xff]  ;;  %438 = vperm.xlu2 %2334, %v420_v44  }
  0x45   : > { %2106 = vmatpush.xpose.msk.msra.mxu3 %vm466_vm0, %v335_v46  ;;  %v386_v46 = vld [vmem:[%s2751_s18 + $0x340] sm:$0xff]  ;;  %1310 = vperm.xlu1 %2333, %v1280_v45  }
  0x46   : > { %2035 = vmatpush.xpose.msk.msra.mxu0 %vm466_vm0, %v286_v49  ;;  %v353_v49 = vld [vmem:[%s2751_s18 + $0x238] sm:$0xff]  ;;  %1300 = vperm.xlu0 %2332, %v1278_v48  }
  0x47   : > { %2059 = vmatpush.xpose.msk.msra.mxu1 %vm466_vm0, %v302_v50  ;;  %v369_v50 = vld [vmem:[%s2751_s18 + $0x2b8] sm:$0xff] }
  0x48   : > { %2083 = vmatpush.xpose.msk.msra.mxu2 %vm466_vm0, %v318_v51  ;;  %v3033_v51 = vld [vmem:[%s3833_s1 + $0x20] sm:$0xff] }
  0x49   : > { %2107 = vmatpush.xpose.msk.msra.mxu3 %vm466_vm0, %v334_v52  ;;  %v385_v52 = vld [vmem:[%s2751_s18 + $0x338] sm:$0xff] }
  0x4a   : > { %2036 = vmatpush.xpose.msk.msra.mxu0 %vm466_vm0, %v285_v53  ;;  %v401_v53 = vld [vmem:[%s2751_s18 + $0x3b8] sm:$0xff] }
  0x4b   : > { %2060 = vmatpush.xpose.msk.msra.mxu1 %vm466_vm0, %v301_v54  ;;  %v352_v54 = vld [vmem:[%s2751_s18 + $0x230] sm:$0xff] }
  0x4c   : > { %2084 = vmatpush.xpose.msk.msra.mxu2 %vm466_vm0, %v317_v55  ;;  %v368_v55 = vld [vmem:[%s2751_s18 + $0x2b0] sm:$0xff] }
  0x4d   : > { %2108 = vmatpush.xpose.msk.msra.mxu3 %vm466_vm0, %v333_v56  ;;  %v1277_v56 = vld [vmem:[%s3836_s4 + $0x10] sm:$0xff] }
  0x4e   : > { %2037 = vmatpush.xpose.msk.msra.mxu0 %vm466_vm0, %v284_v59  ;;  %v1275_v59 = vld [vmem:[%s3836_s4] sm:$0xff]  ;;  %1295 = vperm.xlu1 %2333, %v1277_v56  }
  0x4f   : > { %2061 = vmatpush.xpose.msk.msra.mxu1 %vm466_vm0, %v300_v60  ;;  %v351_v60 = vld [vmem:[%s2751_s18 + $0x228] sm:$0xff]  ;;  %1285 = vperm.xlu0 %2332, %v1275_v59  }
  0x50   : > { %2085 = vmatpush.xpose.msk.msra.mxu2 %vm466_vm0, %v316_v61  ;;  %v367_v61 = vld [vmem:[%s2751_s18 + $0x2a8] sm:$0xff] }
  0x51   : > { %2109 = vmatpush.xpose.msk.msra.mxu3 %vm466_vm0, %v332_v62  ;;  %v3068_v62 = vld [vmem:[%s3833_s1 + $0x28] sm:$0xff] }
  0x52   : > { %2038 = vmatpush.xpose.msk.msra.mxu0 %vm466_vm0, %v283_v63  ;;  %v383_v63 = vld [vmem:[%s2751_s18 + $0x328] sm:$0xff] }
  0x53   : > { %2062 = vmatpush.xpose.msk.msra.mxu1 %vm466_vm0, %v299_v0  ;;  %v399_v0 = vld [vmem:[%s2751_s18 + $0x3a8] sm:$0xff] }
  0x54   : > { %2086 = vmatpush.xpose.msk.msra.mxu2 %vm466_vm0, %v315_v1  ;;  %v350_v1 = vld [vmem:[%s2751_s18 + $0x220] sm:$0xff] }
  0x55   : > { %2110 = vmatpush.xpose.msk.msra.mxu3 %vm466_vm0, %v331_v2  ;;  %v366_v2 = vld [vmem:[%s2751_s18 + $0x2a0] sm:$0xff] }
  0x56   : > { %2039 = vmatpush.xpose.msk.msra.mxu0 %vm466_vm0, %v282_v4  ;;  %v382_v4 = vld [vmem:[%s2751_s18 + $0x320] sm:$0xff]  ;;  %1744 = vperm.xlu1 %2333, %v1741_v3  }
  0x57   : > { %2063 = vmatpush.xpose.msk.msra.mxu1 %vm466_vm0, %v298_v5  ;;  %v398_v5 = vld [vmem:[%s2751_s18 + $0x3a0] sm:$0xff] }
  0x58   : > { %2087 = vmatpush.xpose.msk.msra.mxu2 %vm466_vm0, %v314_v6  ;;  %v349_v6 = vld [vmem:[%s2751_s18 + $0x218] sm:$0xff] }
  0x59   : > { %2111 = vmatpush.xpose.msk.msra.mxu3 %vm466_vm0, %v330_v7  ;;  %2040 = vmatmul.msk.f32.vlgmr.msra.gmra.mxu0 %vm466_vm0, %v2902_v10  ;;  %v365_v7 = vld [vmem:[%s2751_s18 + $0x298] sm:$0xff] }
  0x5a   : > { %2120 = vmatpush.xpose.msk.msrb.mxu0 %vm466_vm0, %v361_v8  ;;  %2064 = vmatmul.msk.f32.vlgmr.msra.gmra.mxu1 %vm466_vm0, %v2902_v10  ;;  %v3097_v8 = vld [vmem:[%s3833_s1 + $0x30] sm:$0xff] }
  0x5b   : > { %2144 = vmatpush.xpose.msk.msrb.mxu1 %vm466_vm0, %v377_v9  ;;  %2088 = vmatmul.msk.f32.vlgmr.msra.gmra.mxu2 %vm466_vm0, %v2902_v10  ;;  %v381_v9 = vld [vmem:[%s2751_s18 + $0x318] sm:$0xff] }
  0x5c   : > { %2112 = vmatmul.msk.f32.vlgmr.msra.gmra.mxu3 %vm466_vm0, %v2902_v10  ;;  %2168 = vmatpush.xpose.msk.msrb.mxu2 %vm466_vm0, %v393_v11  ;;  %v397_v11 = vld [vmem:[%s2751_s18 + $0x398] sm:$0xff] }
  0x5d   : > { %2192 = vmatpush.xpose.msk.msrb.mxu3 %vm466_vm0, %v409_v12  ;;  %v348_v12 = vld [vmem:[%s2751_s18 + $0x210] sm:$0xff] }
  0x5e   : > { %2121 = vmatpush.xpose.msk.msrb.mxu0 %vm466_vm0, %v360_v13  ;;  %v364_v13 = vld [vmem:[%s2751_s18 + $0x290] sm:$0xff] }
  0x5f   : > { %2145 = vmatpush.xpose.msk.msrb.mxu1 %vm466_vm0, %v376_v14  ;;  %v380_v14 = vld [vmem:[%s2751_s18 + $0x310] sm:$0xff] }
  0x60   : > { %2169 = vmatpush.xpose.msk.msrb.mxu2 %vm466_vm0, %v392_v15  ;;  %v396_v15 = vld [vmem:[%s2751_s18 + $0x390] sm:$0xff] }
  0x61   : > { %2193 = vmatpush.xpose.msk.msrb.mxu3 %vm466_vm0, %v408_v16  ;;  %2041 = vmatmul.msk.f32.gmra.mxu0 %vm466_vm0, %v2931_v19  ;;  %v1282_v16 = vld [vmem:[%s3836_s4 + $0x38] sm:$0xff] }
  0x62   : > { %2122 = vmatpush.xpose.msk.msrb.mxu0 %vm466_vm0, %v359_v17  ;;  %2065 = vmatmul.msk.f32.gmra.mxu1 %vm466_vm0, %v2931_v19  ;;  %v347_v17 = vld [vmem:[%s2751_s18 + $0x208] sm:$0xff] }
  0x63   : > { %2146 = vmatpush.xpose.msk.msrb.mxu1 %vm466_vm0, %v375_v18  ;;  %2089 = vmatmul.msk.f32.gmra.mxu2 %vm466_vm0, %v2931_v19  ;;  %v363_v18 = vld [vmem:[%s2751_s18 + $0x288] sm:$0xff] }
  0x64   : > { %2113 = vmatmul.msk.f32.gmra.mxu3 %vm466_vm0, %v2931_v19  ;;  %2170 = vmatpush.xpose.msk.msrb.mxu2 %vm466_vm0, %v391_v20  ;;  %v417_v20 = vld [vmem:[%s3833_s1 + $0x38] sm:$0xff] }
  0x65   : > { %2194 = vmatpush.xpose.msk.msrb.mxu3 %vm466_vm0, %v407_v21  ;;  %1320 = vperm.xlu2 %2334, %v1282_v16   ;;  %v379_v21 = vld [vmem:[%s2751_s18 + $0x308] sm:$0xff] }
  0x66   : > { %2123 = vmatpush.xpose.msk.msrb.mxu0 %vm466_vm0, %v358_v22  ;;  %v395_v22 = vld [vmem:[%s2751_s18 + $0x388] sm:$0xff] }
  0x67   : > { %2147 = vmatpush.xpose.msk.msrb.mxu1 %vm466_vm0, %v374_v23  ;;  %v346_v23 = vld [vmem:[%s2751_s18 + $0x200] sm:$0xff] }
  0x68   : > { %2171 = vmatpush.xpose.msk.msrb.mxu2 %vm466_vm0, %v390_v24  ;;  %v362_v24 = vld [vmem:[%s2751_s18 + $0x280] sm:$0xff] }
  0x69   : > { %2195 = vmatpush.xpose.msk.msrb.mxu3 %vm466_vm0, %v406_v25  ;;  %2042 = vmatmul.msk.f32.gmra.mxu0 %vm466_vm0, %v2960_v28  ;;  %v378_v25 = vld [vmem:[%s2751_s18 + $0x300] sm:$0xff] }
  0x6a   : > { %2124 = vmatpush.xpose.msk.msrb.mxu0 %vm466_vm0, %v357_v26  ;;  %2066 = vmatmul.msk.f32.gmra.mxu1 %vm466_vm0, %v2960_v28  ;;  %v394_v26 = vld [vmem:[%s2751_s18 + $0x380] sm:$0xff]  ;;  %s2607_s18 = scalar_lea.hbm %s2606_s22, 8 }
  0x6b   : > { %2148 = vmatpush.xpose.msk.msrb.mxu1 %vm466_vm0, %v373_v27  ;;  %2090 = vmatmul.msk.f32.gmra.mxu2 %vm466_vm0, %v2960_v28  ;;  %v1279_v27 = vld [vmem:[%s3836_s4 + $0x20] sm:$0xff]  ;;  %p2608_p11 = scmp.ne.s32.totalorder %s2606_s22, %s2607_s18  ;;  %p2613_p1 = scmp.lt.s32.totalorder %s2611_s25, %s2607_s18 }
  0x6c   : > { %2114 = vmatmul.msk.f32.gmra.mxu3 %vm466_vm0, %v2960_v28  ;;  %2172 = vmatpush.xpose.msk.msrb.mxu2 %vm466_vm0, %v389_v29  ;;  %v1276_v29 = vld [vmem:[%s3836_s4 + $0x8] sm:$0xff] }
  0x6d   : > { %2196 = vmatpush.xpose.msk.msrb.mxu3 %vm466_vm0, %v405_v30  ;;  %1305 = vperm.xlu2 %2334, %v1279_v27   ;;  %p2609_p12 = pnand %p2608_p11, %p2737_p5  ;;  %p2614_p2 = por %p2613_p1, %p2612_p0 }
  0x6e   : > { %2125 = vmatpush.xpose.msk.msrb.mxu0 %vm466_vm0, %v356_v31 }
  0x6f   : > { %2149 = vmatpush.xpose.msk.msrb.mxu1 %vm466_vm0, %v372_v32  ;;  %p2610_p13 = pneg %p2609_p12 }
  0x70   : > { %2173 = vmatpush.xpose.msk.msrb.mxu2 %vm466_vm0, %v388_v34 }
  0x71   : > { %2197 = vmatpush.xpose.msk.msrb.mxu3 %vm466_vm0, %v404_v35  ;;  %2043 = vmatmul.msk.f32.gmra.mxu0 %vm466_vm0, %v2995_v39  ;;  %p2615_p3 = pnand %p2614_p2, %p2610_p13 }
  0x72   : > { %2126 = vmatpush.xpose.msk.msrb.mxu0 %vm466_vm0, %v355_v37  ;;  %2067 = vmatmul.msk.f32.gmra.mxu1 %vm466_vm0, %v2995_v39 }
  0x73   : > { %2150 = vmatpush.xpose.msk.msrb.mxu1 %vm466_vm0, %v371_v38  ;;  %2091 = vmatmul.msk.f32.gmra.mxu2 %vm466_vm0, %v2995_v39 }
  0x74   : > { %2115 = vmatmul.msk.f32.gmra.mxu3 %vm466_vm0, %v2995_v39  ;;  %2174 = vmatpush.xpose.msk.msrb.mxu2 %vm466_vm0, %v387_v40 }
  0x75   : > { %2198 = vmatpush.xpose.msk.msrb.mxu3 %vm466_vm0, %v403_v41  ;;  %1290 = vperm.xlu2 %2334, %v1276_v29  }
  0x76   : > { %2127 = vmatpush.xpose.msk.msrb.mxu0 %vm466_vm0, %v354_v42 }
  0x77   : > { %2151 = vmatpush.xpose.msk.msrb.mxu1 %vm466_vm0, %v370_v43 }
  0x78   : > { %2175 = vmatpush.xpose.msk.msrb.mxu2 %vm466_vm0, %v386_v46 }
  0x79   : > { %2199 = vmatpush.xpose.msk.msrb.mxu3 %vm466_vm0, %v402_v47  ;;  %2044 = vmatmul.msk.f32.gmra.mxu0 %vm466_vm0, %v3033_v51 }
  0x7a   : > { %2128 = vmatpush.xpose.msk.msrb.mxu0 %vm466_vm0, %v353_v49  ;;  %2068 = vmatmul.msk.f32.gmra.mxu1 %vm466_vm0, %v3033_v51 }
  0x7b   : > { %2152 = vmatpush.xpose.msk.msrb.mxu1 %vm466_vm0, %v369_v50  ;;  %2092 = vmatmul.msk.f32.gmra.mxu2 %vm466_vm0, %v3033_v51 }
  0x7c   : > { %2116 = vmatmul.msk.f32.gmra.mxu3 %vm466_vm0, %v3033_v51  ;;  %2176 = vmatpush.xpose.msk.msrb.mxu2 %vm466_vm0, %v385_v52 }
  0x7d   : > { %2200 = vmatpush.xpose.msk.msrb.mxu3 %vm466_vm0, %v401_v53 }
  0x7e   : > { %2129 = vmatpush.xpose.msk.msrb.mxu0 %vm466_vm0, %v352_v54 }
  0x7f   : > { %2153 = vmatpush.xpose.msk.msrb.mxu1 %vm466_vm0, %v368_v55 }
  0x80   : > { %2177 = vmatpush.xpose.msk.msrb.mxu2 %vm466_vm0, %v384_v57 }
  0x81   : > { %2201 = vmatpush.xpose.msk.msrb.mxu3 %vm466_vm0, %v400_v58  ;;  %2045 = vmatmul.msk.f32.gmra.mxu0 %vm466_vm0, %v3068_v62 }
  0x82   : > { %2130 = vmatpush.xpose.msk.msrb.mxu0 %vm466_vm0, %v351_v60  ;;  %2069 = vmatmul.msk.f32.gmra.mxu1 %vm466_vm0, %v3068_v62 }
  0x83   : > { %2154 = vmatpush.xpose.msk.msrb.mxu1 %vm466_vm0, %v367_v61  ;;  %2093 = vmatmul.msk.f32.gmra.mxu2 %vm466_vm0, %v3068_v62 }
  0x84   : > { %2117 = vmatmul.msk.f32.gmra.mxu3 %vm466_vm0, %v3068_v62  ;;  %2178 = vmatpush.xpose.msk.msrb.mxu2 %vm466_vm0, %v383_v63 }
  0x85   : > { %2202 = vmatpush.xpose.msk.msrb.mxu3 %vm466_vm0, %v399_v0 }
  0x86   : > { %2131 = vmatpush.xpose.msk.msrb.mxu0 %vm466_vm0, %v350_v1 }
  0x87   : > { %2155 = vmatpush.xpose.msk.msrb.mxu1 %vm466_vm0, %v366_v2 }
  0x88   : > { %2179 = vmatpush.xpose.msk.msrb.mxu2 %vm466_vm0, %v382_v4 }
  0x89   : > { %2203 = vmatpush.xpose.msk.msrb.mxu3 %vm466_vm0, %v398_v5  ;;  %2046 = vmatmul.msk.f32.gmra.mxu0 %vm466_vm0, %v3097_v8 }
  0x8a   : > { %2132 = vmatpush.xpose.msk.msrb.mxu0 %vm466_vm0, %v349_v6  ;;  %2070 = vmatmul.msk.f32.gmra.mxu1 %vm466_vm0, %v3097_v8  ;;  %v3227_v41 = vpop.permute.xlu1 %453 }
  0x8b   : > { %2156 = vmatpush.xpose.msk.msrb.mxu1 %vm466_vm0, %v365_v7  ;;  %2094 = vmatmul.msk.f32.gmra.mxu2 %vm466_vm0, %v3097_v8  ;;  %v3229_v42 = vpop.permute.xlu0 %463 }
  0x8c   : > { %2118 = vmatmul.msk.f32.gmra.mxu3 %vm466_vm0, %v3097_v8  ;;  %2180 = vmatpush.xpose.msk.msrb.mxu2 %vm466_vm0, %v381_v9 }
  0x8d   : > { %2204 = vmatpush.xpose.msk.msrb.mxu3 %vm466_vm0, %v397_v11 }
  0x8e   : > { %2133 = vmatpush.xpose.msk.msrb.mxu0 %vm466_vm0, %v348_v12 }
  0x8f   : > { %2157 = vmatpush.xpose.msk.msrb.mxu1 %vm466_vm0, %v364_v13 }
  0x90   : > { %2181 = vmatpush.xpose.msk.msrb.mxu2 %vm466_vm0, %v380_v14 }
  0x91   : > { %2205 = vmatpush.xpose.msk.msrb.mxu3 %vm466_vm0, %v396_v15  ;;  %2047 = vmatmul.msk.f32.gmra.mxu0 %vm466_vm0, %v417_v20 }
  0x92   : > { %2134 = vmatpush.xpose.msk.msrb.mxu0 %vm466_vm0, %v347_v17  ;;  %2071 = vmatmul.msk.f32.gmra.mxu1 %vm466_vm0, %v417_v20  ;;  %v3235_v47 = vpop.permute.xlu1 %448 }
  0x93   : > { %2158 = vmatpush.xpose.msk.msrb.mxu1 %vm466_vm0, %v363_v18  ;;  %2095 = vmatmul.msk.f32.gmra.mxu2 %vm466_vm0, %v417_v20  ;;  %v3237_v48 = vpop.permute.xlu0 %458 }
  0x94   : > { %2119 = vmatmul.msk.f32.gmra.mxu3 %vm466_vm0, %v417_v20  ;;  %2182 = vmatpush.xpose.msk.msrb.mxu2 %vm466_vm0, %v379_v21 }
  0x95   : > { %2206 = vmatpush.xpose.msk.msrb.mxu3 %vm466_vm0, %v395_v22  ;;  %v3239_v49 = vpop.permute.xlu2 %443 }
  0x96   : > { %2135 = vmatpush.xpose.msk.msrb.mxu0 %vm466_vm0, %v346_v23 }
  0x97   : > { %2159 = vmatpush.xpose.msk.msrb.mxu1 %vm466_vm0, %v362_v24 }
  0x98   : > { %2183 = vmatpush.xpose.msk.msrb.mxu2 %vm466_vm0, %v378_v25 }
  0x99   : > { %2207 = vmatpush.xpose.msk.msrb.mxu3 %vm466_vm0, %v394_v26  ;;  %2136 = vmatmul.msk.f32.vlgmr.msrb.gmra.mxu0 %vm466_vm0, %v2902_v10 }
  0x9a   : > { %2160 = vmatmul.msk.f32.vlgmr.msrb.gmra.mxu1 %vm466_vm0, %v2902_v10  ;;  %v3245_v54 = vpop.permute.xlu1 %428 }
  0x9b   : > { %2184 = vmatmul.msk.f32.vlgmr.msrb.gmra.mxu2 %vm466_vm0, %v2902_v10 }
  0x9c   : > { %2208 = vmatmul.msk.f32.vlgmr.msrb.gmra.mxu3 %vm466_vm0, %v2902_v10 }
  0x9e   : > { %v3252_v63 = vpop.permute.xlu2 %438 }
  0xa0   : > { %v3247_v55 = vpop.permute.xlu0 %433 }
  0xa1   : > { %2137 = vmatmul.msk.f32.gmra.mxu0 %vm466_vm0, %v2931_v19 }
  0xa2   : > { %2161 = vmatmul.msk.f32.gmra.mxu1 %vm466_vm0, %v2931_v19 }
  0xa3   : > { %2185 = vmatmul.msk.f32.gmra.mxu2 %vm466_vm0, %v2931_v19 }
  0xa4   : > { %2209 = vmatmul.msk.f32.gmra.mxu3 %vm466_vm0, %v2931_v19 }
  0xa9   : > { %2138 = vmatmul.msk.f32.gmra.mxu0 %vm466_vm0, %v2960_v28 }
  0xaa   : > { %2162 = vmatmul.msk.f32.gmra.mxu1 %vm466_vm0, %v2960_v28 }
  0xab   : > { %2186 = vmatmul.msk.f32.gmra.mxu2 %vm466_vm0, %v2960_v28 }
  0xac   : > { %2210 = vmatmul.msk.f32.gmra.mxu3 %vm466_vm0, %v2960_v28 }
  0xb1   : > { %2139 = vmatmul.msk.f32.gmra.mxu0 %vm466_vm0, %v2995_v39 }
  0xb2   : > { %2163 = vmatmul.msk.f32.gmra.mxu1 %vm466_vm0, %v2995_v39 }
  0xb3   : > { %2187 = vmatmul.msk.f32.gmra.mxu2 %vm466_vm0, %v2995_v39 }
  0xb4   : > { %2211 = vmatmul.msk.f32.gmra.mxu3 %vm466_vm0, %v2995_v39 }
  0xb9   : > { %2140 = vmatmul.msk.f32.gmra.mxu0 %vm466_vm0, %v3033_v51 }
  0xba   : > { %2164 = vmatmul.msk.f32.gmra.mxu1 %vm466_vm0, %v3033_v51 }
  0xbb   : > { %2188 = vmatmul.msk.f32.gmra.mxu2 %vm466_vm0, %v3033_v51 }
  0xbc   : > { %2212 = vmatmul.msk.f32.gmra.mxu3 %vm466_vm0, %v3033_v51 }
  0xc1   : > { %2141 = vmatmul.msk.f32.gmra.mxu0 %vm466_vm0, %v3068_v62 }
  0xc2   : > { %2165 = vmatmul.msk.f32.gmra.mxu1 %vm466_vm0, %v3068_v62 }
  0xc3   : > { %2189 = vmatmul.msk.f32.gmra.mxu2 %vm466_vm0, %v3068_v62 }
  0xc4   : > { %2213 = vmatmul.msk.f32.gmra.mxu3 %vm466_vm0, %v3068_v62 }
  0xc9   : > { %2142 = vmatmul.msk.f32.gmra.mxu0 %vm466_vm0, %v3097_v8 }
  0xca   : > { %2166 = vmatmul.msk.f32.gmra.mxu1 %vm466_vm0, %v3097_v8 }
  0xcb   : > { %2190 = vmatmul.msk.f32.gmra.mxu2 %vm466_vm0, %v3097_v8 }
  0xcc   : > { %2214 = vmatmul.msk.f32.gmra.mxu3 %vm466_vm0, %v3097_v8 }
  0xd1   : > { %2143 = vmatmul.msk.f32.gmra.mxu0 %vm466_vm0, %v417_v20 }
  0xd2   : > { %2167 = vmatmul.msk.f32.gmra.mxu1 %vm466_vm0, %v417_v20 }
  0xd3   : > { %2191 = vmatmul.msk.f32.gmra.mxu2 %vm466_vm0, %v417_v20 }
  0xd4   : > { %2215 = vmatmul.msk.f32.gmra.mxu3 %vm466_vm0, %v417_v20 }
  0xd6   : > { %v892_v10 = vpop.f32.mrf.mxu0 }
  0xd7   : > { %v933_v19 = vpop.f32.mrf.mxu1  ;;  %v893_v56 = vadd.f32 %v892_v10, %v3245_v54 }
  0xd8   : > { %v934_v59 = vadd.f32 %v933_v19, %v3245_v54 }
  0xd9   : > { %2335 = vtanh.f32 %v893_v56 }
  0xda   : > { %2337 = vtanh.f32 %v934_v59 }
  0xde   : > { %v3215_v28 = vpop.f32.mrf.mxu2  ;;  %v895_v31 = vpop.f32.mrf.mxu0 }
  0xdf   : > { %v3217_v30 = vpop.f32.mrf.mxu3  ;;  %v936_v32 = vpop.f32.mrf.mxu1  ;;  %v896_v62 = vadd.f32 %v895_v31, %v3247_v55 }
  0xe0   : > { %v937_v0 = vadd.f32 %v936_v32, %v3247_v55  ;;  %v3261_v9 = vpop.eup %2335 }
  0xe1   : > { %2339 = vtanh.f32 %v896_v62  ;;  %v3263_v13 = vpop.eup %2337 }
  0xe2   : > { %2341 = vtanh.f32 %v937_v0 }
  0xe6   : > { %v3219_v33 = vpop.f32.mrf.mxu2  ;;  %v898_v35 = vpop.f32.mrf.mxu0 }
  0xe7   : > { %v3221_v34 = vpop.f32.mrf.mxu3  ;;  %v939_v36 = vpop.f32.mrf.mxu1  ;;  %v899_v1 = vadd.f32 %v898_v35, %v3252_v63 }
  0xe8   : > { %v940_v2 = vadd.f32 %v939_v36, %v3252_v63  ;;  %v3267_v16 = vpop.eup %2339 }
  0xe9   : > { %2343 = vtanh.f32 %v899_v1  ;;  %v3270_v18 = vpop.eup %2341 }
  0xea   : > { %2345 = vtanh.f32 %v940_v2 }
  0xee   : > { %v3223_v37 = vpop.f32.mrf.mxu2  ;;  %v901_v39 = vpop.f32.mrf.mxu0 }
  0xef   : > { %v3225_v38 = vpop.f32.mrf.mxu3  ;;  %v942_v40 = vpop.f32.mrf.mxu1  ;;  %v902_v3 = vadd.f32 %v901_v39, %v3239_v49 }
  0xf0   : > { %v943_v4 = vadd.f32 %v942_v40, %v3239_v49  ;;  %v3273_v21 = vpop.eup %2343 }
  0xf1   : > { %2347 = vtanh.f32 %v902_v3  ;;  %v3276_v23 = vpop.eup %2345 }
  0xf2   : > { %2349 = vtanh.f32 %v943_v4 }
  0xf6   : > { %v3231_v43 = vpop.f32.mrf.mxu2  ;;  %v904_v45 = vpop.f32.mrf.mxu0 }
  0xf7   : > { %v3233_v44 = vpop.f32.mrf.mxu3  ;;  %v945_v46 = vpop.f32.mrf.mxu1  ;;  %v905_v5 = vadd.f32 %v904_v45, %v3235_v47 }
  0xf8   : > { %v946_v6 = vadd.f32 %v945_v46, %v3235_v47  ;;  %v2348_v25 = vpop.eup %2347  ;;  %v1025_v0 = vadd.f32 %v3233_v44, %v3239_v49  ;;  %v1022_v44 = vadd.f32 %v3225_v38, %v3252_v63  ;;  %v975_v38 = vadd.f32 %v3215_v28, %v3245_v54 }
  0xf9   : > { %2351 = vtanh.f32 %v905_v5  ;;  %v2350_v26 = vpop.eup %2349 }
  0xfa   : > { %2353 = vtanh.f32 %v946_v6  ;;  %v978_v6 = vadd.f32 %v3219_v33, %v3247_v55  ;;  %v1016_v33 = vadd.f32 %v3217_v30, %v3245_v54 }
  0xfe   : > { %v3241_v50 = vpop.f32.mrf.mxu2  ;;  %v907_v52 = vpop.f32.mrf.mxu0 }
  0xff   : > { %v3243_v51 = vpop.f32.mrf.mxu3  ;;  %v948_v53 = vpop.f32.mrf.mxu1  ;;  %v908_v22 = vadd.f32 %v907_v52, %v3227_v41  ;;  %v987_v59 = vadd.f32 %v3241_v50, %v3235_v47 }
 0x100   : > { %v949_v24 = vadd.f32 %v948_v53, %v3227_v41  ;;  %v2352_v10 = vpop.eup %2351 }
 0x101   : > { %v2354_v39 = vpop.eup %2353 }
 0x106   : > { %v989_v57 = vpop.f32.mrf.mxu2  ;;  %v910_v60 = vpop.f32.mrf.mxu0 }
 0x107   : > { %v1030_v58 = vpop.f32.mrf.mxu3  ;;  %v951_v61 = vpop.f32.mrf.mxu1  ;;  %v911_v17 = vadd.f32 %v910_v60, %v3237_v48  ;;  %v990_v46 = vadd.f32 %v989_v57, %v3227_v41  ;;  %v984_v57 = vadd.f32 %v3231_v43, %v3239_v49 }
 0x108   : > { %v952_v20 = vadd.f32 %v951_v61, %v3237_v48  ;;  %v1031_v53 = vadd.f32 %v1030_v58, %v3227_v41  ;;  %v1028_v61 = vadd.f32 %v3243_v51, %v3235_v47  ;;  %v981_v51 = vadd.f32 %v3223_v37, %v3252_v63 }
 0x10e   : > { %v992_v7 = vpop.f32.mrf.mxu2  ;;  %v913_v11 = vpop.f32.mrf.mxu0 }
 0x10f   : > { %v1033_v8 = vpop.f32.mrf.mxu3  ;;  %v954_v12 = vpop.f32.mrf.mxu1  ;;  %v914_v14 = vadd.f32 %v913_v11, %v3229_v42  ;;  %v993_v19 = vadd.f32 %v992_v7, %v3237_v48  ;;  %v1019_v7 = vadd.f32 %v3221_v34, %v3247_v55 }
 0x110   : > { %v955_v15 = vadd.f32 %v954_v12, %v3229_v42  ;;  %v1034_v40 = vadd.f32 %v1033_v8, %v3237_v48 }
 0x111   : > { %2355 = vtanh.f32 %v914_v14 }
 0x112   : > { %2357 = vtanh.f32 %v955_v15 }
 0x113   : > { %2359 = vtanh.f32 %v911_v17 }
 0x114   : > { %2361 = vtanh.f32 %v952_v20  ;;  %v3332_v20 = vld [vmem:[%s3835_s3] sm:$0xff] }
 0x115   : > { %2363 = vtanh.f32 %v908_v22 }
 0x116   : > { %v995_v27 = vpop.f32.mrf.mxu2  ;;  %v3282_v35 = vpop.f32.mrf.mxu0  ;;  %2365 = vtanh.f32 %v949_v24 }
 0x117   : > { %v1036_v29 = vpop.f32.mrf.mxu3  ;;  %v996_v31 = vadd.f32 %v995_v27, %v3229_v42  ;;  %v3284_v36 = vpop.f32.mrf.mxu1 }
 0x118   : > { %v1037_v32 = vadd.f32 %v1036_v29, %v3229_v42  ;;  %v2356_v45 = vpop.eup %2355  ;;  %v3351_v29 = vld [vmem:[%s3835_s3 + $0x8] sm:$0xff] }
 0x119   : > { %2367 = vtanh.f32 %v996_v31  ;;  %v2358_v52 = vpop.eup %2357  ;;  %1356 = vmatpush.msra.mxu0 %v2356_v45 }
 0x11a   : > { %2369 = vtanh.f32 %v1037_v32  ;;  %v2360_v56 = vpop.eup %2359  ;;  %1397 = vmatpush.msra.mxu1 %v2358_v52 }
 0x11b   : > { %2371 = vtanh.f32 %v993_v19  ;;  %v2362_v60 = vpop.eup %2361  ;;  %1357 = vmatpush.msra.mxu0 %v2360_v56 }
 0x11c   : > { %2373 = vtanh.f32 %v1034_v40  ;;  %v2364_v62 = vpop.eup %2363  ;;  %1398 = vmatpush.msra.mxu1 %v2362_v60 }
 0x11d   : > { %2375 = vtanh.f32 %v990_v46  ;;  %v2366_v58 = vpop.eup %2365  ;;  %1358 = vmatpush.msra.mxu0 %v2364_v62  ;;  %v3402_v62 = vld [vmem:[%s3835_s3 + $0x20] sm:$0xff] }
 0x11e   : > { %2377 = vtanh.f32 %v1031_v53  ;;  %v3297_v50 = vpop.f32.mrf.mxu2  ;;  %1399 = vmatpush.msra.mxu1 %v2366_v58  ;;  %v3303_v3 = vpop.f32.mrf.mxu0  ;;  %v3385_v53 = vld [vmem:[%s3835_s3 + $0x18] sm:$0xff] }
 0x11f   : > { %v3299_v1 = vpop.f32.mrf.mxu3  ;;  %v2368_v2 = vpop.eup %2367  ;;  %2379 = vtanh.f32 %v987_v59  ;;  %1359 = vmatpush.msra.mxu0 %v2352_v10  ;;  %v1060_v58 = vadd.f32 %v3303_v3, %v3247_v55 }
 0x120   : > { %v3305_v43 = vpop.f32.mrf.mxu1  ;;  %v2370_v4 = vpop.eup %2369  ;;  %2381 = vtanh.f32 %v1028_v61  ;;  %1438 = vmatpush.msra.mxu2 %v2368_v2  ;;  %1400 = vmatpush.msra.mxu1 %v2354_v39  ;;  %v3368_v39 = vld [vmem:[%s3835_s3 + $0x10] sm:$0xff] }
 0x121   : > { %v2372_v5 = vpop.eup %2371  ;;  %2383 = vtanh.f32 %v984_v57  ;;  %1479 = vmatpush.msra.mxu3 %v2370_v4  ;;  %1360 = vmatpush.msra.mxu0 %v2348_v25  ;;  %v1057_v57 = vadd.f32 %v3282_v35, %v3245_v54 }
 0x122   : > { %v2374_v37 = vpop.eup %2373  ;;  %2385 = vtanh.f32 %v1025_v0  ;;  %1439 = vmatpush.msra.mxu2 %v2372_v5  ;;  %1401 = vmatpush.msra.mxu1 %v2350_v26  ;;  %v1101_v0 = vadd.f32 %v3305_v43, %v3247_v55 }
 0x123   : > { %v2376_v8 = vpop.eup %2375  ;;  %2387 = vtanh.f32 %v981_v51  ;;  %1480 = vmatpush.msra.mxu3 %v2374_v37  ;;  %1361 = vmatpush.msra.mxu0 %v3273_v21 }
 0x124   : > { %v2378_v11 = vpop.eup %2377  ;;  %2389 = vtanh.f32 %v1022_v44  ;;  %1440 = vmatpush.msra.mxu2 %v2376_v8  ;;  %1402 = vmatpush.msra.mxu1 %v3276_v23 }
 0x125   : > { %v2380_v12 = vpop.eup %2379  ;;  %2391 = vtanh.f32 %v978_v6  ;;  %1481 = vmatpush.msra.mxu3 %v2378_v11  ;;  %1362 = vmatpush.msra.mxu0 %v3267_v16  ;;  %v3427_v6 = vld [vmem:[%s3835_s3 + $0x28] sm:$0xff] }
 0x126   : > { %v2382_v34 = vpop.eup %2381  ;;  %2393 = vtanh.f32 %v1019_v7  ;;  %v3319_v14 = vpop.f32.mrf.mxu2  ;;  %1441 = vmatpush.msra.mxu2 %v2380_v12  ;;  %1403 = vmatpush.msra.mxu1 %v3270_v18 }
 0x127   : > { %v3321_v28 = vpop.f32.mrf.mxu3  ;;  %v2384_v15 = vpop.eup %2383  ;;  %2395 = vtanh.f32 %v975_v38  ;;  %1482 = vmatpush.msra.mxu3 %v2382_v34  ;;  %1363 = vmatpush.msra.mxu0 %v3261_v9 }
 0x128   : > { %v3325_v30 = vpop.f32.mrf.mxu0  ;;  %v3327_v17 = vpop.f32.mrf.mxu1  ;;  %2397 = vtanh.f32 %v1016_v33  ;;  %1442 = vmatpush.msra.mxu2 %v2384_v15  ;;  %1404 = vmatpush.msra.mxu1 %v3263_v13 }
 0x129   : > { %v2386_v21 = vpop.eup %2385  ;;  %2216 = vmatmul.msk.f32.vlgmr.msra.gmra.mxu0 %vm1323_vm1, %v3332_v20  ;;  %2224 = vmatmul.msk.f32.vlgmr.msra.gmra.mxu1 %vm1323_vm1, %v3332_v20  ;;  %v1063_v35 = vadd.f32 %v3325_v30, %v3252_v63  ;;  %2399 = vtanh.f32 %v1057_v57  ;;  %v1104_v2 = vadd.f32 %v3327_v17, %v3252_v63 }
 0x12a   : > { %v2388_v16 = vpop.eup %2387  ;;  %1483 = vmatpush.msra.mxu3 %v2386_v21  ;;  %2401 = vtanh.f32 %v1060_v58 }
 0x12b   : > { %v2390_v18 = vpop.eup %2389  ;;  %1443 = vmatpush.msra.mxu2 %v2388_v16  ;;  %2403 = vtanh.f32 %v1101_v0 }
 0x12c   : > { %v2392_v22 = vpop.eup %2391  ;;  %1484 = vmatpush.msra.mxu3 %v2390_v18  ;;  %2405 = vtanh.f32 %v1063_v35 }
 0x12d   : > { %v2394_v23 = vpop.eup %2393  ;;  %1444 = vmatpush.msra.mxu2 %v2392_v22  ;;  %2407 = vtanh.f32 %v1104_v2  ;;  %v1098_v2 = vadd.f32 %v3284_v36, %v3245_v54 }
 0x12e   : > { %v2396_v24 = vpop.eup %2395  ;;  %1485 = vmatpush.msra.mxu3 %v2394_v23  ;;  %v3340_v25 = vpop.f32.mrf.mxu2 }
 0x12f   : > { %v2398_v9 = vpop.eup %2397  ;;  %v3342_v26 = vpop.f32.mrf.mxu3  ;;  %1445 = vmatpush.msra.mxu2 %v2396_v24 }
 0x130   : > { %1486 = vmatpush.msra.mxu3 %v2398_v9  ;;  %v3344_v13 = vpop.f32.mrf.mxu0  ;;  %v3346_v27 = vpop.f32.mrf.mxu1  ;;  %2232 = vmatmul.msk.f32.vlgmr.msra.gmra.mxu2 %vm1323_vm1, %v3332_v20  ;;  %v3460_v9 = vld [vmem:[%s3835_s3 + $0x30] sm:$0xff] }
 0x131   : > { %2240 = vmatmul.msk.f32.vlgmr.msra.gmra.mxu3 %vm1323_vm1, %v3332_v20  ;;  %2217 = vmatmul.msk.f32.gmra.mxu0 %vm1323_vm1, %v3351_v29  ;;  %v3436_v38 = vpop.eup %2399  ;;  %v1066_v22 = vadd.f32 %v3344_v13, %v3239_v49 }
 0x132   : > { %2225 = vmatmul.msk.f32.gmra.mxu1 %vm1323_vm1, %v3351_v29  ;;  %v3443_v33 = vpop.eup %2401 }
 0x133   : > { %v3446_v34 = vpop.eup %2403 }
 0x134   : > { %v3449_v30 = vpop.eup %2405 }
 0x135   : > { %v3451_v17 = vpop.eup %2407 }
 0x136   : > { %v3361_v10 = vpop.f32.mrf.mxu2 }
 0x137   : > { %v3363_v19 = vpop.f32.mrf.mxu3 }
 0x138   : > { %v1068_v31 = vpop.f32.mrf.mxu0  ;;  %v1109_v32 = vpop.f32.mrf.mxu1  ;;  %2233 = vmatmul.msk.f32.gmra.mxu2 %vm1323_vm1, %v3351_v29 }
 0x139   : > { %2241 = vmatmul.msk.f32.gmra.mxu3 %vm1323_vm1, %v3351_v29  ;;  %2218 = vmatmul.msk.f32.gmra.mxu0 %vm1323_vm1, %v3368_v39  ;;  %v1069_v51 = vadd.f32 %v1068_v31, %v3235_v47  ;;  %v1110_v3 = vadd.f32 %v1109_v32, %v3235_v47  ;;  %v1107_v32 = vadd.f32 %v3346_v27, %v3239_v49 }
 0x13a   : > { %2226 = vmatmul.msk.f32.gmra.mxu1 %vm1323_vm1, %v3368_v39 }
 0x13b   : > { %2409 = vtanh.f32 %v1069_v51 }
 0x13c   : > { %2411 = vtanh.f32 %v1110_v3  ;;  %v1186_v3 = vadd.f32 %v3342_v26, %v3252_v63  ;;  %v1139_v26 = vadd.f32 %v3297_v50, %v3245_v54 }
 0x13e   : > { %v3378_v40 = vpop.f32.mrf.mxu2 }
 0x13f   : > { %v3380_v45 = vpop.f32.mrf.mxu3  ;;  %v1151_v58 = vadd.f32 %v3378_v40, %v3235_v47  ;;  %v1189_v40 = vadd.f32 %v3363_v19, %v3239_v49  ;;  %v1142_v19 = vadd.f32 %v3319_v14, %v3247_v55 }
 0x140   : > { %v1071_v46 = vpop.f32.mrf.mxu0  ;;  %v1112_v52 = vpop.f32.mrf.mxu1  ;;  %2234 = vmatmul.msk.f32.gmra.mxu2 %vm1323_vm1, %v3368_v39  ;;  %v1192_v35 = vadd.f32 %v3380_v45, %v3235_v47  ;;  %v3493_v47 = vld [vmem:[%s3835_s3 + $0x38] sm:$0xff]  ;;  %v1145_v45 = vadd.f32 %v3340_v25, %v3252_v63 }
 0x141   : > { %2242 = vmatmul.msk.f32.gmra.mxu3 %vm1323_vm1, %v3368_v39  ;;  %2219 = vmatmul.msk.f32.gmra.mxu0 %vm1323_vm1, %v3385_v53  ;;  %v1072_v12 = vadd.f32 %v1071_v46, %v3227_v41  ;;  %v1113_v15 = vadd.f32 %v1112_v52, %v3227_v41  ;;  %v2410_v18 = vpop.eup %2409 }
 0x142   : > { %2227 = vmatmul.msk.f32.gmra.mxu1 %vm1323_vm1, %v3385_v53  ;;  %v2412_v31 = vpop.eup %2411 }
 0x146   : > { %v3395_v56 = vpop.f32.mrf.mxu2 }
 0x147   : > { %v3397_v59 = vpop.f32.mrf.mxu3 }
 0x148   : > { %v1074_v60 = vpop.f32.mrf.mxu0  ;;  %v1115_v61 = vpop.f32.mrf.mxu1  ;;  %2235 = vmatmul.msk.f32.gmra.mxu2 %vm1323_vm1, %v3385_v53  ;;  %v1195_v57 = vadd.f32 %v3397_v59, %v3227_v41  ;;  %v1148_v59 = vadd.f32 %v3361_v10, %v3239_v49 }
 0x149   : > { %2243 = vmatmul.msk.f32.gmra.mxu3 %vm1323_vm1, %v3385_v53  ;;  %2220 = vmatmul.msk.f32.gmra.mxu0 %vm1323_vm1, %v3402_v62  ;;  %v1075_v8 = vadd.f32 %v1074_v60, %v3237_v48  ;;  %v1116_v11 = vadd.f32 %v1115_v61, %v3237_v48  ;;  %v1154_v60 = vadd.f32 %v3395_v56, %v3227_v41 }
 0x14a   : > { %2228 = vmatmul.msk.f32.gmra.mxu1 %vm1323_vm1, %v3402_v62 }
 0x14e   : > { %v1156_v43 = vpop.f32.mrf.mxu2 }
 0x14f   : > { %v1197_v4 = vpop.f32.mrf.mxu3  ;;  %v1157_v46 = vadd.f32 %v1156_v43, %v3237_v48  ;;  %v1183_v43 = vadd.f32 %v3321_v28, %v3247_v55 }
 0x150   : > { %v1077_v44 = vpop.f32.mrf.mxu0  ;;  %v1118_v5 = vpop.f32.mrf.mxu1  ;;  %2236 = vmatmul.msk.f32.gmra.mxu2 %vm1323_vm1, %v3402_v62  ;;  %v1198_v52 = vadd.f32 %v1197_v4, %v3237_v48  ;;  %v1180_v4 = vadd.f32 %v3299_v1, %v3245_v54 }
 0x151   : > { %2244 = vmatmul.msk.f32.gmra.mxu3 %vm1323_vm1, %v3402_v62  ;;  %v1078_v37 = vadd.f32 %v1077_v44, %v3229_v42  ;;  %v1119_v7 = vadd.f32 %v1118_v5, %v3229_v42  ;;  %2221 = vmatmul.msk.f32.gmra.mxu0 %vm1323_vm1, %v3427_v6 }
 0x152   : > { %2229 = vmatmul.msk.f32.gmra.mxu1 %vm1323_vm1, %v3427_v6 }
 0x153   : > { %2413 = vtanh.f32 %v1078_v37 }
 0x154   : > { %2415 = vtanh.f32 %v1119_v7 }
 0x155   : > { %2417 = vtanh.f32 %v1075_v8 }
 0x156   : > { %2419 = vtanh.f32 %v1116_v11  ;;  %v1159_v21 = vpop.f32.mrf.mxu2 }
 0x157   : > { %v1200_v16 = vpop.f32.mrf.mxu3  ;;  %2421 = vtanh.f32 %v1072_v12  ;;  %v1160_v23 = vadd.f32 %v1159_v21, %v3229_v42  ;;  %v3600_v21 = vpop.permute.xlu0 %1315 }
 0x158   : > { %v1201_v24 = vadd.f32 %v1200_v16, %v3229_v42  ;;  %2423 = vtanh.f32 %v1113_v15  ;;  %2237 = vmatmul.msk.f32.gmra.mxu2 %vm1323_vm1, %v3427_v6 }
 0x159   : > { %2245 = vmatmul.msk.f32.gmra.mxu3 %vm1323_vm1, %v3427_v6  ;;  %v2414_v13 = vpop.eup %2413  ;;  %2425 = vtanh.f32 %v1160_v23  ;;  %2222 = vmatmul.msk.f32.gmra.mxu0 %vm1323_vm1, %v3460_v9 }
 0x15a   : > { %v2416_v42 = vpop.eup %2415  ;;  %2427 = vtanh.f32 %v1201_v24  ;;  %2230 = vmatmul.msk.f32.gmra.mxu1 %vm1323_vm1, %v3460_v9  ;;  %1520 = vmatpush.msrb.mxu0 %v2414_v13 }
 0x15b   : > { %v2418_v27 = vpop.eup %2417  ;;  %2429 = vtanh.f32 %v1066_v22  ;;  %1561 = vmatpush.msrb.mxu1 %v2416_v42  ;;  %v3602_v22 = vpop.permute.xlu2 %1320 }
 0x15c   : > { %v2420_v61 = vpop.eup %2419  ;;  %2431 = vtanh.f32 %v1107_v32  ;;  %1521 = vmatpush.msrb.mxu0 %v2418_v27 }
 0x15d   : > { %v2422_v48 = vpop.eup %2421  ;;  %2433 = vtanh.f32 %v1157_v46  ;;  %1562 = vmatpush.msrb.mxu1 %v2420_v61 }
 0x15e   : > { %v2424_v0 = vpop.eup %2423  ;;  %2435 = vtanh.f32 %v1198_v52  ;;  %1522 = vmatpush.msrb.mxu0 %v2422_v48 }
 0x15f   : > { %v2426_v56 = vpop.eup %2425  ;;  %2437 = vtanh.f32 %v1154_v60  ;;  %1563 = vmatpush.msrb.mxu1 %v2424_v0  ;;  %v3608_v32 = vpop.permute.xlu0 %1300 }
 0x160   : > { %v2428_v41 = vpop.eup %2427  ;;  %2439 = vtanh.f32 %v1195_v57  ;;  %2238 = vmatmul.msk.f32.gmra.mxu2 %vm1323_vm1, %v3460_v9  ;;  %1523 = vmatpush.msrb.mxu0 %v2410_v18 }
 0x161   : > { %2246 = vmatmul.msk.f32.gmra.mxu3 %vm1323_vm1, %v3460_v9  ;;  %v2430_v36 = vpop.eup %2429  ;;  %2441 = vtanh.f32 %v1151_v58  ;;  %1564 = vmatpush.msrb.mxu1 %v2412_v31 }
 0x162   : > { %v2432_v10 = vpop.eup %2431  ;;  %2443 = vtanh.f32 %v1192_v35  ;;  %1602 = vmatpush.msrb.mxu2 %v2426_v56  ;;  %1643 = vmatpush.msrb.mxu3 %v2428_v41  ;;  %v3626_v35 = vpop.permute.xlu1 %1310 }
 0x163   : > { %v2434_v51 = vpop.eup %2433  ;;  %2445 = vtanh.f32 %v1098_v2  ;;  %2223 = vmatmul.msk.f32.gmra.mxu0 %vm1323_vm1, %v3493_v47  ;;  %2231 = vmatmul.msk.f32.gmra.mxu1 %vm1323_vm1, %v3493_v47  ;;  %v3610_v13 = vpop.permute.xlu2 %1305 }
 0x164   : > { %v2436_v49 = vpop.eup %2435  ;;  %2447 = vtanh.f32 %v1148_v59  ;;  %1524 = vmatpush.msrb.mxu0 %v2430_v36  ;;  %1565 = vmatpush.msrb.mxu1 %v2432_v10 }
 0x165   : > { %v2438_v25 = vpop.eup %2437  ;;  %2449 = vtanh.f32 %v1189_v40  ;;  %1603 = vmatpush.msrb.mxu2 %v2434_v51  ;;  %1644 = vmatpush.msrb.mxu3 %v2436_v49 }
 0x166   : > { %v2440_v63 = vpop.eup %2439  ;;  %2451 = vtanh.f32 %v1145_v45  ;;  %1525 = vmatpush.msrb.mxu0 %v3449_v30  ;;  %1566 = vmatpush.msrb.mxu1 %v3451_v17 }
 0x167   : > { %v2442_v14 = vpop.eup %2441  ;;  %2453 = vtanh.f32 %v1186_v3  ;;  %1604 = vmatpush.msrb.mxu2 %v2438_v25  ;;  %1645 = vmatpush.msrb.mxu3 %v2440_v63  ;;  %v3616_v60 = vpop.permute.xlu0 %1285 }
 0x168   : > { %v2444_v55 = vpop.eup %2443  ;;  %2455 = vtanh.f32 %v1142_v19  ;;  %1526 = vmatpush.msrb.mxu0 %v3443_v33  ;;  %1567 = vmatpush.msrb.mxu1 %v3446_v34 }
 0x169   : > { %v2446_v28 = vpop.eup %2445  ;;  %2457 = vtanh.f32 %v1183_v43  ;;  %1605 = vmatpush.msrb.mxu2 %v2442_v14  ;;  %1646 = vmatpush.msrb.mxu3 %v2444_v55 }
 0x16a   : > { %v2448_v50 = vpop.eup %2447  ;;  %2459 = vtanh.f32 %v1139_v26  ;;  %2239 = vmatmul.msk.f32.gmra.mxu2 %vm1323_vm1, %v3493_v47  ;;  %2247 = vmatmul.msk.f32.gmra.mxu3 %vm1323_vm1, %v3493_v47  ;;  %v3644_v14 = vpop.permute.xlu1 %1295 }
 0x16b   : > { %v2450_v54 = vpop.eup %2449  ;;  %2461 = vtanh.f32 %v1180_v4  ;;  %1527 = vmatpush.msrb.mxu0 %v3436_v38  ;;  %1568 = vmatpush.msrb.mxu1 %v2446_v28  ;;  %v3623_v58 = vpop.permute.xlu2 %1290 }
 0x16c   : > { %v2452_v1 = vpop.eup %2451  ;;  %1606 = vmatpush.msrb.mxu2 %v2448_v50  ;;  %1647 = vmatpush.msrb.mxu3 %v2450_v54 }
 0x16d   : > { %v2454_v44 = vpop.eup %2453  ;;  %2248 = vmatmul.msk.f32.vlgmr.msrb.gmra.mxu0 %vm1323_vm1, %v3332_v20  ;;  %2256 = vmatmul.msk.f32.vlgmr.msrb.gmra.mxu1 %vm1323_vm1, %v3332_v20 }
 0x16e   : > { %v2456_v5 = vpop.eup %2455  ;;  %1607 = vmatpush.msrb.mxu2 %v2452_v1  ;;  %1648 = vmatpush.msrb.mxu3 %v2454_v44 }
 0x16f   : > { %v2458_v37 = vpop.eup %2457 }
 0x170   : > { %v2460_v7 = vpop.eup %2459  ;;  %1608 = vmatpush.msrb.mxu2 %v2456_v5  ;;  %1649 = vmatpush.msrb.mxu3 %v2458_v37 }
 0x171   : > { %v2462_v8 = vpop.eup %2461 }
 0x172   : > { %1609 = vmatpush.msrb.mxu2 %v2460_v7  ;;  %1650 = vmatpush.msrb.mxu3 %v2462_v8 }
 0x173   : > { %2264 = vmatmul.msk.f32.vlgmr.msrb.gmra.mxu2 %vm1323_vm1, %v3332_v20  ;;  %2272 = vmatmul.msk.f32.vlgmr.msrb.gmra.mxu3 %vm1323_vm1, %v3332_v20 }
 0x175   : > { %2249 = vmatmul.msk.f32.gmra.mxu0 %vm1323_vm1, %v3351_v29  ;;  %2257 = vmatmul.msk.f32.gmra.mxu1 %vm1323_vm1, %v3351_v29 }
 0x17b   : > { %2265 = vmatmul.msk.f32.gmra.mxu2 %vm1323_vm1, %v3351_v29  ;;  %2273 = vmatmul.msk.f32.gmra.mxu3 %vm1323_vm1, %v3351_v29 }
 0x17d   : > { %2250 = vmatmul.msk.f32.gmra.mxu0 %vm1323_vm1, %v3368_v39  ;;  %2258 = vmatmul.msk.f32.gmra.mxu1 %vm1323_vm1, %v3368_v39 }
 0x183   : > { %2266 = vmatmul.msk.f32.gmra.mxu2 %vm1323_vm1, %v3368_v39  ;;  %2274 = vmatmul.msk.f32.gmra.mxu3 %vm1323_vm1, %v3368_v39 }
 0x185   : > { %2251 = vmatmul.msk.f32.gmra.mxu0 %vm1323_vm1, %v3385_v53  ;;  %2259 = vmatmul.msk.f32.gmra.mxu1 %vm1323_vm1, %v3385_v53 }
 0x18b   : > { %2267 = vmatmul.msk.f32.gmra.mxu2 %vm1323_vm1, %v3385_v53  ;;  %2275 = vmatmul.msk.f32.gmra.mxu3 %vm1323_vm1, %v3385_v53 }
 0x18d   : > { %2252 = vmatmul.msk.f32.gmra.mxu0 %vm1323_vm1, %v3402_v62  ;;  %2260 = vmatmul.msk.f32.gmra.mxu1 %vm1323_vm1, %v3402_v62 }
 0x193   : > { %2268 = vmatmul.msk.f32.gmra.mxu2 %vm1323_vm1, %v3402_v62  ;;  %2276 = vmatmul.msk.f32.gmra.mxu3 %vm1323_vm1, %v3402_v62 }
 0x195   : > { %2253 = vmatmul.msk.f32.gmra.mxu0 %vm1323_vm1, %v3427_v6  ;;  %2261 = vmatmul.msk.f32.gmra.mxu1 %vm1323_vm1, %v3427_v6 }
 0x19b   : > { %2269 = vmatmul.msk.f32.gmra.mxu2 %vm1323_vm1, %v3427_v6  ;;  %2277 = vmatmul.msk.f32.gmra.mxu3 %vm1323_vm1, %v3427_v6 }
 0x19d   : > { %2254 = vmatmul.msk.f32.gmra.mxu0 %vm1323_vm1, %v3460_v9  ;;  %2262 = vmatmul.msk.f32.gmra.mxu1 %vm1323_vm1, %v3460_v9 }
 0x1a3   : > { %2270 = vmatmul.msk.f32.gmra.mxu2 %vm1323_vm1, %v3460_v9  ;;  %2278 = vmatmul.msk.f32.gmra.mxu3 %vm1323_vm1, %v3460_v9 }
 0x1a5   : > { %2255 = vmatmul.msk.f32.gmra.mxu0 %vm1323_vm1, %v3493_v47  ;;  %2263 = vmatmul.msk.f32.gmra.mxu1 %vm1323_vm1, %v3493_v47 }
 0x1a6   : > { %v1365_v20 = vpop.f32.mrf.mxu0  ;;  %v1406_v29 = vpop.f32.mrf.mxu1 }
 0x1a7   : > { %v1366_v48 = vadd.f32 %v1365_v20, %v3616_v60  ;;  %v1407_v0 = vadd.f32 %v1406_v29, %v3616_v60 }
 0x1a9   : > { %2463 = vtanh.f32 %v1366_v48 }
 0x1aa   : > { %2465 = vtanh.f32 %v1407_v0 }
 0x1ab   : > { %2271 = vmatmul.msk.f32.gmra.mxu2 %vm1323_vm1, %v3493_v47  ;;  %2279 = vmatmul.msk.f32.gmra.mxu3 %vm1323_vm1, %v3493_v47 }
 0x1ae   : > { %v1368_v39 = vpop.f32.mrf.mxu0 }
 0x1af   : > { %v3586_v53 = vpop.f32.mrf.mxu1  ;;  %v1369_v56 = vadd.f32 %v1368_v39, %v3623_v58  ;;  %v3636_v19 = vpop.eup %2463 }
 0x1b0   : > { %v3639_v43 = vpop.eup %2465  ;;  %v1410_v37 = vadd.f32 %v3586_v53, %v3623_v58 }
 0x1b1   : > { %2467 = vtanh.f32 %v1369_v56 }
 0x1b3   : > { %v3588_v62 = vpop.f32.mrf.mxu2 }
 0x1b4   : > { %v3590_v6 = vpop.f32.mrf.mxu3 }
 0x1b6   : > { %v1371_v38 = vpop.f32.mrf.mxu0 }
 0x1b7   : > { %v1412_v11 = vpop.f32.mrf.mxu1  ;;  %v3642_v26 = vpop.eup %2467  ;;  %v1372_v28 = vadd.f32 %v1371_v38, %v3644_v14 }
 0x1b8   : > { %v1413_v54 = vadd.f32 %v1412_v11, %v3644_v14 }
 0x1bb   : > { %v3592_v33 = vpop.f32.mrf.mxu2 }
 0x1bc   : > { %v3594_v12 = vpop.f32.mrf.mxu3 }
 0x1be   : > { %v1374_v34 = vpop.f32.mrf.mxu0 }
 0x1bf   : > { %v1415_v15 = vpop.f32.mrf.mxu1  ;;  %v1375_v63 = vadd.f32 %v1374_v34, %v3608_v32 }
 0x1c0   : > { %v1416_v4 = vadd.f32 %v1415_v15, %v3608_v32 }
 0x1c3   : > { %v3596_v30 = vpop.f32.mrf.mxu2 }
 0x1c4   : > { %v3598_v17 = vpop.f32.mrf.mxu3 }
 0x1c6   : > { %v1377_v16 = vpop.f32.mrf.mxu0 }
 0x1c7   : > { %v1418_v18 = vpop.f32.mrf.mxu1  ;;  %v1378_v49 = vadd.f32 %v1377_v16, %v3610_v13 }
 0x1c8   : > { %v1419_v25 = vadd.f32 %v1418_v18, %v3610_v13 }
 0x1cb   : > { %v3604_v23 = vpop.f32.mrf.mxu2 }
 0x1cc   : > { %v3606_v24 = vpop.f32.mrf.mxu3 }
 0x1ce   : > { %v1380_v9 = vpop.f32.mrf.mxu0 }
 0x1cf   : > { %v1421_v31 = vpop.f32.mrf.mxu1  ;;  %v1381_v10 = vadd.f32 %v1380_v9, %v3626_v35 }
 0x1d0   : > { %v1422_v3 = vadd.f32 %v1421_v31, %v3626_v35 }
 0x1d3   : > { %v3612_v46 = vpop.f32.mrf.mxu2 }
 0x1d4   : > { %v3614_v42 = vpop.f32.mrf.mxu3 }
 0x1d6   : > { %v1383_v52 = vpop.f32.mrf.mxu0 }
 0x1d7   : > { %v1424_v27 = vpop.f32.mrf.mxu1  ;;  %v1384_v59 = vadd.f32 %v1383_v52, %v3600_v21 }
 0x1d8   : > { %v1425_v40 = vadd.f32 %v1424_v27, %v3600_v21  ;;  %v1460_v27 = vadd.f32 %v3612_v46, %v3610_v13  ;;  %v1498_v46 = vadd.f32 %v3606_v24, %v3608_v32  ;;  %v3687_v24 = vld [vmem:[%s3837_s5] sm:$0x1] }
 0x1db   : > { %v3618_v61 = vpop.f32.mrf.mxu2 }
 0x1dc   : > { %v3620_v57 = vpop.f32.mrf.mxu3  ;;  %v1463_v18 = vadd.f32 %v3618_v61, %v3626_v35  ;;  %v1501_v61 = vadd.f32 %v3614_v42, %v3610_v13 }
 0x1dd   : > { %v1504_v31 = vadd.f32 %v3620_v57, %v3626_v35  ;;  %v1457_v57 = vadd.f32 %v3604_v23, %v3608_v32 }
 0x1e0   : > { %v1386_v2 = vpop.f32.mrf.mxu0  ;;  %v1427_v41 = vpop.f32.mrf.mxu1 }
 0x1e1   : > { %v1387_v47 = vadd.f32 %v1386_v2, %v3602_v22  ;;  %v1428_v36 = vadd.f32 %v1427_v41, %v3602_v22 }
 0x1e3   : > { %2469 = vtanh.f32 %v1387_v47  ;;  %v1465_v45 = vpop.f32.mrf.mxu2  ;;  %v1454_v47 = vadd.f32 %v3596_v30, %v3644_v14 }
 0x1e4   : > { %v1506_v51 = vpop.f32.mrf.mxu3  ;;  %2471 = vtanh.f32 %v1428_v36  ;;  %v1466_v38 = vadd.f32 %v1465_v45, %v3600_v21 }
 0x1e5   : > { %2473 = vtanh.f32 %v1384_v59  ;;  %v1507_v15 = vadd.f32 %v1506_v51, %v3600_v21 }
 0x1e6   : > { %2475 = vtanh.f32 %v1425_v40  ;;  %v1495_v40 = vadd.f32 %v3598_v17, %v3644_v14  ;;  %v1492_v17 = vadd.f32 %v3594_v12, %v3623_v58  ;;  %v1489_v12 = vadd.f32 %v3590_v6, %v3616_v60 }
 0x1e7   : > { %2477 = vtanh.f32 %v1381_v10  ;;  %v1451_v10 = vadd.f32 %v3592_v33, %v3623_v58 }
 0x1e8   : > { %2479 = vtanh.f32 %v1422_v3  ;;  %v1448_v3 = vadd.f32 %v3588_v62, %v3616_v60 }
 0x1e9   : > { %v2470_v55 = vpop.eup %2469  ;;  %2481 = vtanh.f32 %v1378_v49 }
 0x1ea   : > { %v2472_v50 = vpop.eup %2471  ;;  %2483 = vtanh.f32 %v1419_v25  ;;  %v3649_v1 = vpop.f32.mrf.mxu0  ;;  %1759 = vmatpush.msra.mxu0 %v2470_v55 }
 0x1eb   : > { %v3651_v44 = vpop.f32.mrf.mxu1  ;;  %v2474_v5 = vpop.eup %2473  ;;  %2485 = vtanh.f32 %v1375_v63  ;;  %1779 = vmatpush.msra.mxu1 %v2472_v50 }
 0x1ec   : > { %v2476_v7 = vpop.eup %2475  ;;  %2487 = vtanh.f32 %v1416_v4  ;;  %1760 = vmatpush.msra.mxu0 %v2474_v5 }
 0x1ed   : > { %v2478_v8 = vpop.eup %2477  ;;  %2489 = vtanh.f32 %v1372_v28  ;;  %v1468_v20 = vpop.f32.mrf.mxu2  ;;  %1780 = vmatpush.msra.mxu1 %v2476_v7 }
 0x1ee   : > { %v1509_v29 = vpop.f32.mrf.mxu3  ;;  %v2480_v39 = vpop.eup %2479  ;;  %2491 = vtanh.f32 %v1413_v54  ;;  %v1469_v11 = vadd.f32 %v1468_v20, %v3602_v22  ;;  %1761 = vmatpush.msra.mxu0 %v2478_v8 }
 0x1ef   : > { %v1510_v34 = vadd.f32 %v1509_v29, %v3602_v22  ;;  %v2482_v53 = vpop.eup %2481  ;;  %2493 = vtanh.f32 %v1410_v37  ;;  %1781 = vmatpush.msra.mxu1 %v2480_v39 }
 0x1f0   : > { %v2484_v16 = vpop.eup %2483  ;;  %2495 = vtanh.f32 %v1469_v11  ;;  %1762 = vmatpush.msra.mxu0 %v2482_v53 }
 0x1f1   : > { %v2486_v9 = vpop.eup %2485  ;;  %2497 = vtanh.f32 %v1510_v34  ;;  %1782 = vmatpush.msra.mxu1 %v2484_v16 }
 0x1f2   : > { %v2488_v52 = vpop.eup %2487  ;;  %2499 = vtanh.f32 %v1466_v38  ;;  %v3665_v48 = vpop.f32.mrf.mxu0  ;;  %1763 = vmatpush.msra.mxu0 %v2486_v9 }
 0x1f3   : > { %v3667_v0 = vpop.f32.mrf.mxu1  ;;  %v2490_v56 = vpop.eup %2489  ;;  %2501 = vtanh.f32 %v1507_v15  ;;  %1783 = vmatpush.msra.mxu1 %v2488_v52  ;;  %v1571_v52 = vadd.f32 %v3651_v44, %v3616_v60 }
 0x1f4   : > { %v2492_v2 = vpop.eup %2491  ;;  %2503 = vtanh.f32 %v1463_v18  ;;  %1764 = vmatpush.msra.mxu0 %v2490_v56 }
 0x1f5   : > { %v2494_v41 = vpop.eup %2493  ;;  %2505 = vtanh.f32 %v1504_v31  ;;  %1784 = vmatpush.msra.mxu1 %v2492_v2  ;;  %v1530_v31 = vadd.f32 %v3649_v1, %v3616_v60  ;;  %v1574_v2 = vadd.f32 %v3667_v0, %v3623_v58 }
 0x1f6   : > { %v2496_v59 = vpop.eup %2495  ;;  %2507 = vtanh.f32 %v1460_v27  ;;  %v3677_v42 = vpop.f32.mrf.mxu2  ;;  %1765 = vmatpush.msra.mxu0 %v3642_v26 }
 0x1f7   : > { %v3679_v36 = vpop.f32.mrf.mxu3  ;;  %v2498_v23 = vpop.eup %2497  ;;  %2509 = vtanh.f32 %v1501_v61  ;;  %1785 = vmatpush.msra.mxu1 %v2494_v41  ;;  %1799 = vmatpush.msra.mxu2 %v2496_v59  ;;  %v1533_v61 = vadd.f32 %v3665_v48, %v3623_v58 }
 0x1f8   : > { %v2500_v30 = vpop.eup %2499  ;;  %2511 = vtanh.f32 %v1457_v57  ;;  %1819 = vmatpush.msra.mxu3 %v2498_v23  ;;  %1766 = vmatpush.msra.mxu0 %v3636_v19 }
 0x1f9   : > { %v2502_v45 = vpop.eup %2501  ;;  %2513 = vtanh.f32 %v1498_v46  ;;  %1786 = vmatpush.msra.mxu1 %v3639_v43  ;;  %1800 = vmatpush.msra.mxu2 %v2500_v30 }
 0x1fa   : > { %v2504_v51 = vpop.eup %2503  ;;  %2515 = vtanh.f32 %v1454_v47  ;;  %v3697_v49 = vpop.f32.mrf.mxu0  ;;  %1820 = vmatpush.msra.mxu3 %v2502_v45  ;;  %2280 = vmatmul.msk.f32.vlgmr.msra.gmra.mxu0 %vm1323_vm1, %v3687_v24 }
 0x1fb   : > { %v3699_v33 = vpop.f32.mrf.mxu1  ;;  %v2506_v19 = vpop.eup %2505  ;;  %2517 = vtanh.f32 %v1495_v40  ;;  %2281 = vmatmul.msk.f32.vlgmr.msra.gmra.mxu1 %vm1323_vm1, %v3687_v24  ;;  %1801 = vmatpush.msra.mxu2 %v2504_v51 }
 0x1fc   : > { %v2508_v25 = vpop.eup %2507  ;;  %2519 = vtanh.f32 %v1451_v10  ;;  %1821 = vmatpush.msra.mxu3 %v2506_v19 }
 0x1fd   : > { %v2510_v62 = vpop.eup %2509  ;;  %2521 = vtanh.f32 %v1492_v17  ;;  %1802 = vmatpush.msra.mxu2 %v2508_v25  ;;  %v1536_v25 = vadd.f32 %v3697_v49, %v3644_v14 }
 0x1fe   : > { %v2512_v43 = vpop.eup %2511  ;;  %2523 = vtanh.f32 %v1448_v3  ;;  %v3707_v63 = vpop.f32.mrf.mxu2  ;;  %1822 = vmatpush.msra.mxu3 %v2510_v62 }
 0x1ff   : > { %v3709_v26 = vpop.f32.mrf.mxu3  ;;  %v2514_v4 = vpop.eup %2513  ;;  %2525 = vtanh.f32 %v1489_v12  ;;  %1803 = vmatpush.msra.mxu2 %v2512_v43  ;;  %v1577_v43 = vadd.f32 %v3699_v33, %v3644_v14 }
 0x200   : > { %v2516_v6 = vpop.eup %2515  ;;  %1823 = vmatpush.msra.mxu3 %v2514_v4  ;;  %2527 = vtanh.f32 %v1530_v31 }
 0x201   : > { %v2518_v55 = vpop.eup %2517  ;;  %1804 = vmatpush.msra.mxu2 %v2516_v6  ;;  %2529 = vtanh.f32 %v1571_v52 }
 0x202   : > { %v2520_v28 = vpop.eup %2519  ;;  %v1538_v50 = vpop.f32.mrf.mxu0  ;;  %1824 = vmatpush.msra.mxu3 %v2518_v55  ;;  %2531 = vtanh.f32 %v1533_v61 }
 0x203   : > { %v1579_v54 = vpop.f32.mrf.mxu1  ;;  %v2522_v5 = vpop.eup %2521  ;;  %1805 = vmatpush.msra.mxu2 %v2520_v28  ;;  %2533 = vtanh.f32 %v1574_v2  ;;  %v1539_v51 = vadd.f32 %v1538_v50, %v3608_v32 }
 0x204   : > { %v2524_v37 = vpop.eup %2523  ;;  %1825 = vmatpush.msra.mxu3 %v2522_v5  ;;  %v1580_v19 = vadd.f32 %v1579_v54, %v3608_v32 }
 0x205   : > { %v2526_v7 = vpop.eup %2525  ;;  %1806 = vmatpush.msra.mxu2 %v2524_v37 }
 0x206   : > { %v3711_v8 = vpop.f32.mrf.mxu2  ;;  %1826 = vmatpush.msra.mxu3 %v2526_v7  ;;  %2282 = vmatmul.msk.f32.vlgmr.msra.gmra.mxu2 %vm1323_vm1, %v3687_v24  ;;  %v3741_v40 = vpop.eup %2527 }
 0x207   : > { %v3713_v20 = vpop.f32.mrf.mxu3  ;;  %2283 = vmatmul.msk.f32.vlgmr.msra.gmra.mxu3 %vm1323_vm1, %v3687_v24  ;;  %v3744_v10 = vpop.eup %2529 }
 0x208   : > { %v2532_v17 = vpop.eup %2531 }
 0x209   : > { %v3748_v3 = vpop.eup %2533 }
 0x20a   : > { %v1541_v29 = vpop.f32.mrf.mxu0 }
 0x20b   : > { %v1582_v39 = vpop.f32.mrf.mxu1  ;;  %v1542_v30 = vadd.f32 %v1541_v29, %v3610_v13 }
 0x20c   : > { %v1583_v45 = vadd.f32 %v1582_v39, %v3610_v13 }
 0x20e   : > { %v3719_v38 = vpop.f32.mrf.mxu2 }
 0x20f   : > { %v3721_v11 = vpop.f32.mrf.mxu3  ;;  %v1621_v31 = vadd.f32 %v3719_v38, %v3608_v32 }
 0x210   : > { %v1662_v52 = vadd.f32 %v3721_v11, %v3608_v32  ;;  %v1653_v11 = vadd.f32 %v3679_v36, %v3616_v60 }
 0x212   : > { %v1544_v34 = vpop.f32.mrf.mxu0 }
 0x213   : > { %v1585_v53 = vpop.f32.mrf.mxu1  ;;  %v1545_v47 = vadd.f32 %v1544_v34, %v3626_v35 }
 0x214   : > { %v1586_v48 = vadd.f32 %v1585_v53, %v3626_v35 }
 0x216   : > { %v3723_v15 = vpop.f32.mrf.mxu2 }
 0x217   : > { %v3725_v16 = vpop.f32.mrf.mxu3 }
 0x21a   : > { %v1547_v18 = vpop.f32.mrf.mxu0 }
 0x21b   : > { %v1588_v9 = vpop.f32.mrf.mxu1  ;;  %v1548_v46 = vadd.f32 %v1547_v18, %v3600_v21 }
 0x21c   : > { %v1589_v44 = vadd.f32 %v1588_v9, %v3600_v21 }
 0x21e   : > { %v1626_v27 = vpop.f32.mrf.mxu2 }
 0x21f   : > { %v1667_v56 = vpop.f32.mrf.mxu3  ;;  %v1627_v29 = vadd.f32 %v1626_v27, %v3626_v35  ;;  %v1618_v27 = vadd.f32 %v3711_v8, %v3644_v14  ;;  %v1656_v8 = vadd.f32 %v3709_v26, %v3623_v58 }
 0x220   : > { %v1668_v34 = vadd.f32 %v1667_v56, %v3626_v35  ;;  %v1615_v56 = vadd.f32 %v3707_v63, %v3623_v58 }
 0x222   : > { %v1550_v57 = vpop.f32.mrf.mxu0 }
 0x223   : > { %v1591_v41 = vpop.f32.mrf.mxu1  ;;  %v1551_v1 = vadd.f32 %v1550_v57, %v3602_v22 }
 0x224   : > { %v1592_v59 = vadd.f32 %v1591_v41, %v3602_v22 }
 0x225   : > { %2535 = vtanh.f32 %v1551_v1 }
 0x226   : > { %2537 = vtanh.f32 %v1592_v59  ;;  %v1629_v0 = vpop.f32.mrf.mxu2 }
 0x227   : > { %v1670_v23 = vpop.f32.mrf.mxu3  ;;  %2539 = vtanh.f32 %v1548_v46  ;;  %v1630_v54 = vadd.f32 %v1629_v0, %v3600_v21 }
 0x228   : > { %2541 = vtanh.f32 %v1589_v44  ;;  %v1671_v37 = vadd.f32 %v1670_v23, %v3600_v21  ;;  %v1665_v21 = vadd.f32 %v3725_v16, %v3610_v13  ;;  %v1659_v16 = vadd.f32 %v3713_v20, %v3644_v14  ;;  %v1745_v44 = vpop.permute.xlu1 %1744 }
 0x229   : > { %2543 = vtanh.f32 %v1545_v47  ;;  %v1612_v20 = vadd.f32 %v3677_v42, %v3616_v60  ;;  %v1747_v0 = vperm.slane %v1745_v44, 0 }
 0x22a   : > { %2545 = vtanh.f32 %v1586_v48 }
 0x22b   : > { %v2536_v12 = vpop.eup %2535  ;;  %2547 = vtanh.f32 %v1542_v30 }
 0x22c   : > { %v2538_v62 = vpop.eup %2537  ;;  %2549 = vtanh.f32 %v1583_v45  ;;  %1839 = vmatpush.msrb.mxu0 %v2536_v12 }
 0x22d   : > { %v2540_v4 = vpop.eup %2539  ;;  %2551 = vtanh.f32 %v1539_v51  ;;  %1859 = vmatpush.msrb.mxu1 %v2538_v62 }
 0x22e   : > { %v2542_v6 = vpop.eup %2541  ;;  %2553 = vtanh.f32 %v1580_v19  ;;  %v1632_v55 = vpop.f32.mrf.mxu2  ;;  %1840 = vmatpush.msrb.mxu0 %v2540_v4 }
 0x22f   : > { %v1673_v28 = vpop.f32.mrf.mxu3  ;;  %v2544_v50 = vpop.eup %2543  ;;  %2555 = vtanh.f32 %v1536_v25  ;;  %v1633_v49 = vadd.f32 %v1632_v55, %v3602_v22  ;;  %1860 = vmatpush.msrb.mxu1 %v2542_v6 }
 0x230   : > { %v1674_v5 = vadd.f32 %v1673_v28, %v3602_v22  ;;  %v2546_v33 = vpop.eup %2545  ;;  %2557 = vtanh.f32 %v1577_v43  ;;  %1841 = vmatpush.msrb.mxu0 %v2544_v50  ;;  %v1624_v22 = vadd.f32 %v3723_v15, %v3610_v13 }
 0x231   : > { %v2548_v7 = vpop.eup %2547  ;;  %2559 = vtanh.f32 %v1633_v49  ;;  %1861 = vmatpush.msrb.mxu1 %v2546_v33 }
 0x232   : > { %v2550_v39 = vpop.eup %2549  ;;  %2561 = vtanh.f32 %v1674_v5  ;;  %1842 = vmatpush.msrb.mxu0 %v2548_v7 }
 0x233   : > { %v2552_v53 = vpop.eup %2551  ;;  %2563 = vtanh.f32 %v1630_v54  ;;  %1862 = vmatpush.msrb.mxu1 %v2550_v39 }
 0x234   : > { %v2554_v18 = vpop.eup %2553  ;;  %2565 = vtanh.f32 %v1671_v37  ;;  %1843 = vmatpush.msrb.mxu0 %v2552_v53 }
 0x235   : > { %v2556_v9 = vpop.eup %2555  ;;  %2567 = vtanh.f32 %v1627_v29  ;;  %1863 = vmatpush.msrb.mxu1 %v2554_v18 }
 0x236   : > { %v2558_v35 = vpop.eup %2557  ;;  %2569 = vtanh.f32 %v1668_v34  ;;  %1844 = vmatpush.msrb.mxu0 %v2556_v9 }
 0x237   : > { %v2560_v15 = vpop.eup %2559  ;;  %2571 = vtanh.f32 %v1624_v22  ;;  %1864 = vmatpush.msrb.mxu1 %v2558_v35 }
 0x238   : > { %v2562_v13 = vpop.eup %2561  ;;  %2573 = vtanh.f32 %v1665_v21  ;;  %1845 = vmatpush.msrb.mxu0 %v2532_v17  ;;  %1879 = vmatpush.msrb.mxu2 %v2560_v15 }
 0x239   : > { %v2564_v38 = vpop.eup %2563  ;;  %2575 = vtanh.f32 %v1621_v31  ;;  %1865 = vmatpush.msrb.mxu1 %v3748_v3  ;;  %1899 = vmatpush.msrb.mxu3 %v2562_v13 }
 0x23a   : > { %v2566_v32 = vpop.eup %2565  ;;  %2577 = vtanh.f32 %v1662_v52  ;;  %1846 = vmatpush.msrb.mxu0 %v3741_v40  ;;  %1880 = vmatpush.msrb.mxu2 %v2564_v38 }
 0x23b   : > { %v2568_v14 = vpop.eup %2567  ;;  %2579 = vtanh.f32 %v1618_v27  ;;  %1866 = vmatpush.msrb.mxu1 %v3744_v10  ;;  %1900 = vmatpush.msrb.mxu3 %v2566_v32 }
 0x23c   : > { %v2570_v63 = vpop.eup %2569  ;;  %2581 = vtanh.f32 %v1659_v16  ;;  %2284 = vmatmul.msk.f32.vlgmr.msrb.gmra.mxu0 %vm1323_vm1, %v3687_v24  ;;  %2285 = vmatmul.msk.f32.vlgmr.msrb.gmra.mxu1 %vm1323_vm1, %v3687_v24 }
 0x23d   : > { %v2572_v58 = vpop.eup %2571  ;;  %2583 = vtanh.f32 %v1615_v56  ;;  %1881 = vmatpush.msrb.mxu2 %v2568_v14  ;;  %1901 = vmatpush.msrb.mxu3 %v2570_v63 }
 0x23e   : > { %v2574_v42 = vpop.eup %2573  ;;  %2585 = vtanh.f32 %v1656_v8 }
 0x23f   : > { %v2576_v26 = vpop.eup %2575  ;;  %2587 = vtanh.f32 %v1612_v20  ;;  %1882 = vmatpush.msrb.mxu2 %v2572_v58  ;;  %1902 = vmatpush.msrb.mxu3 %v2574_v42 }
 0x240   : > { %v2578_v61 = vpop.eup %2577  ;;  %2589 = vtanh.f32 %v1653_v11 }
 0x241   : > { %v2580_v60 = vpop.eup %2579  ;;  %1883 = vmatpush.msrb.mxu2 %v2576_v26  ;;  %1903 = vmatpush.msrb.mxu3 %v2578_v61 }
 0x242   : > { %v2582_v36 = vpop.eup %2581 }
 0x243   : > { %v2584_v2 = vpop.eup %2583  ;;  %1884 = vmatpush.msrb.mxu2 %v2580_v60  ;;  %1904 = vmatpush.msrb.mxu3 %v2582_v36 }
 0x244   : > { %v2586_v57 = vpop.eup %2585 }
 0x245   : > { %v2588_v41 = vpop.eup %2587  ;;  %1885 = vmatpush.msrb.mxu2 %v2584_v2  ;;  %1905 = vmatpush.msrb.mxu3 %v2586_v57 }
 0x246   : > { %v2590_v46 = vpop.eup %2589 }
 0x247   : > { %1886 = vmatpush.msrb.mxu2 %v2588_v41  ;;  %1906 = vmatpush.msrb.mxu3 %v2590_v46 }
 0x248   : > { %2286 = vmatmul.msk.f32.vlgmr.msrb.gmra.mxu2 %vm1323_vm1, %v3687_v24  ;;  %2287 = vmatmul.msk.f32.vlgmr.msrb.gmra.mxu3 %vm1323_vm1, %v3687_v24 }
 0x277   : > { %v1768_v1 = vpop.f32.mrf.mxu0 }
 0x278   : > { %v1788_v59 = vpop.f32.mrf.mxu1  ;;  %v1769_v55 = vadd.f32 %v1768_v1, %v1747_v0 }
 0x279   : > { %v1789_v45 = vadd.f32 %v1788_v59, %v1747_v0 }
 0x27b   : > { %v1919_v19 = vrot.slane %v1789_v45, 7 }
 0x27d   : > { %v1927_v49 = vsel %vm1926_vm2, %v1769_v55, %v1919_v19 }
 0x289   : > { %v1808_v47 = vpop.f32.mrf.mxu2 }
 0x28a   : > { %v1828_v48 = vpop.f32.mrf.mxu3  ;;  %v1809_v30 = vadd.f32 %v1808_v47, %v1747_v0 }
 0x28b   : > { %v1829_v10 = vadd.f32 %v1828_v48, %v1747_v0 }
 0x28c   : > { %v1920_v24 = vrot.slane %v1809_v30, 6 }
 0x28d   : > { %v1921_v3 = vrot.slane %v1829_v10, 5 }
 0x28f   : > { %v1929_v28 = vsel %vm1928_vm3, %v1920_v24, %v1921_v3 }
 0x290   : > { %v1931_v37 = vsel %vm1930_vm6, %v1927_v49, %v1929_v28 }
 0x2b9   : > { %v1848_v23 = vpop.f32.mrf.mxu0  ;;  %v1868_v40 = vpop.f32.mrf.mxu1 }
 0x2ba   : > { %v1849_v17 = vadd.f32 %v1848_v23, %v1747_v0  ;;  %v1869_v51 = vadd.f32 %v1868_v40, %v1747_v0 }
 0x2bc   : > { %v1922_v62 = vrot.slane %v1849_v17, 4  ;;  %v1923_v43 = vrot.slane %v1869_v51, 3 }
 0x2be   : > { %v1933_v5 = vsel %vm1932_vm4, %v1922_v62, %v1923_v43 }
 0x2cb   : > { %v1888_v12 = vpop.f32.mrf.mxu2  ;;  %v1908_v25 = vpop.f32.mrf.mxu3 }
 0x2cc   : > { %v1889_v4 = vadd.f32 %v1888_v12, %v1747_v0  ;;  %v1909_v6 = vadd.f32 %v1908_v25, %v1747_v0 }
 0x2ce   : > { %v1924_v50 = vrot.slane %v1889_v4, 2  ;;  %v1925_v54 = vrot.slane %v1909_v6, 1 }
 0x2d0   : > { %v1935_v33 = vsel %vm1934_vm5, %v1924_v50, %v1925_v54 }
 0x2d1   : > { %v1937_v7 = vsel %vm1936_vm7, %v1933_v5, %v1935_v33 }
 0x2d2   : > { %v1939_v29 = vsel %vm1938_vm8, %v1931_v37, %v1937_v7 }
 0x2d3   : > { %1941 = vst [vmem:[%s274_s6] sm:$0xff] %v1939_v29 }
 0x2d4   : > { %2618 = shalt.err (!%p2615_p3)
}
 0x2d5   : > { %2292 = dma.vmem_to_hbm [thread:$0]  (%p2737_p5), %s1956_s19, 128, %s1958_s20, %s1943_s21  }
 0x2d6 PF: > { %p2298_p4 = scmp.ge.s32.totalorder %s2653_s29, 2  ;;  %s1969_s9 = sand.u32 1, %s2641_s26  }
 0x2d7   : > { %s1970_s14 = scalar_lea.sflag [#allocation4], %s1969_s9 }
 0x2d8   : > { %p2295_p7 = pnand %p2298_p4, %p2741_p6 }
 0x2da   : > { %p2296_p8 = pneg %p2295_p7 }
 0x2dc   : > { %2636 = dma.done.wait (%p2296_p8), %s1970_s14, 128  }
 0x2dd   : > { %2638 = vsyncadd (%p2296_p8), %s1970_s14, 4294967168  ;;  %p19_p9 = scmp.ge.s32.totalorder %s2724_s8, 5   ;;  %s3842_s26 = smov %s2645_s27 }
 0x2de   : > { %s3843_s27 = smov %s2649_s28  ;;  %s3844_s28 = smov %s2735_s11 }
 0x2df   : > { %s3845_s29 = smov %s2724_s8  ;;  %21 = sbr.rel (!%p19_p9) target bundleno = 6 (0x6), region = 83 }
 0x2e4   :  { %1976 = vsyncpa [#allocation4], 1 }
 0x2e5   :  { %1978 = vsyncpa [#allocation4 + $0x1], 1 }

</bundles_post_ra>
